<compile_context>
chip_gen: v5e
topology: v5e:2x2
jax: 0.10.0
libtpu: 0.0.40
codegen_flags: <defaults>
</compile_context>

<pallas_src>
import functools
import math

import jax
import jax.numpy as jnp
from jax.experimental import pallas as pl
from jax.experimental.pallas import tpu as pltpu

# torchvision-style clamp on dw/dh so exp() cannot overflow.
_BBOX_XFORM_CLIP = math.log(1000.0 / 16.0)


# ----------------------------------------------------------------------------
# Fused kernel: 3x3 conv (im2col matmul) + ReLU + fused 1x1 heads
#               + XYWHA box decode + sigmoid(objectness)
# ----------------------------------------------------------------------------
def rpn_fused_kernel(x_ref, w1_ref, b1_ref, w2_ref, b2_ref, a_ref,
                     p_ref, s_ref):
    # x_ref : (1, 9C, T)   bf16 im2col patches (channel-major, T lanes)
    # w1_ref: (C, 9C)      bf16 3x3-conv weight in im2col layout
    # b1_ref: (C, 1)       f32  conv bias
    # w2_ref: (7A, C)      bf16 fused 1x1 heads; rows are component-major:
    #                      [cls_a..., dx_a..., dy_a..., dw_a..., dh_a...,
    #                       dang_a..., d6_a...]
    # b2_ref: (7A, 1)      f32
    # a_ref : (5, A, T)    f32 anchors (x_ctr, y_ctr, w, h, angle), chan-major
    # p_ref : (1, 5, A, T) f32 decoded proposals
    # s_ref : (1, A, T)    f32 sigmoid(objectness)
    A = s_ref.shape[1]

    x = x_ref[0]                                              # (9C, T) bf16
    t = jnp.dot(w1_ref[...], x, preferred_element_type=jnp.float32)
    t = jnp.maximum(t + b1_ref[...], 0.0)                     # ReLU, (C, T)

    head = jnp.dot(w2_ref[...], t.astype(w2_ref.dtype),
                   preferred_element_type=jnp.float32) + b2_ref[...]  # (7A, T)

    cls = head[0:A]                                           # (A, T)
    dx, dy = head[A:2 * A], head[2 * A:3 * A]
    dw, dh = head[3 * A:4 * A], head[4 * A:5 * A]
    dang = head[5 * A:6 * A]
    # TODO(synk): XYWHA_XYWHA_BoxCoder source not provided; the 6th regression
    # channel head[6A:7A] is unused (angle decoded additively from channel 5).

    ax, ay = a_ref[0], a_ref[1]
    aw, ah, aang = a_ref[2], a_ref[3], a_ref[4]

    p_ref[0, 0] = dx * aw + ax
    p_ref[0, 1] = dy * ah + ay
    p_ref[0, 2] = aw * jnp.exp(jnp.minimum(dw, _BBOX_XFORM_CLIP))
    p_ref[0, 3] = ah * jnp.exp(jnp.minimum(dh, _BBOX_XFORM_CLIP))
    p_ref[0, 4] = aang + dang
    s_ref[0] = 1.0 / (1.0 + jnp.exp(-cls))


def _pick_hw_tile(hw):
    # >=512 lanes gets ~85% of HBM roofline; cap at 512 so double-buffered
    # blocks stay comfortably inside v7x's 64 MiB VMEM at production C.
    for t in (512, 256, 128):
        if hw % t == 0:
            return t
    return hw


def run_rpn_head_decode(patches, w1, b1, w2, b2, anchors_cm, t_hw):
    N, K9C, HW = patches.shape
    C = w1.shape[0]
    A = anchors_cm.shape[1]
    n_hw = HW // t_hw

    return pl.pallas_call(
        rpn_fused_kernel,
        out_shape=(jax.ShapeDtypeStruct((N, 5, A, HW), jnp.float32),
                   jax.ShapeDtypeStruct((N, A, HW), jnp.float32)),
        grid=(N, n_hw),
        in_specs=[
            pl.BlockSpec((1, K9C, t_hw), lambda n, j: (n, 0, j)),
            pl.BlockSpec((C, K9C), lambda n, j: (0, 0)),       # resident
            pl.BlockSpec((C, 1), lambda n, j: (0, 0)),         # resident
            pl.BlockSpec((7 * A, C), lambda n, j: (0, 0)),     # resident
            pl.BlockSpec((7 * A, 1), lambda n, j: (0, 0)),     # resident
            pl.BlockSpec((5, A, t_hw), lambda n, j: (0, 0, j)),  # shared over n
        ],
        out_specs=(pl.BlockSpec((1, 5, A, t_hw), lambda n, j: (n, 0, 0, j)),
                   pl.BlockSpec((1, A, t_hw), lambda n, j: (n, 0, j))),
        compiler_params=pltpu.CompilerParams(
            dimension_semantics=("parallel", "parallel"),
            vmem_limit_bytes=32 * 1024 * 1024),
    )(patches, w1, b1, w2, b2, anchors_cm)


# ----------------------------------------------------------------------------
# Glue: anchors, filter_proposals
# ----------------------------------------------------------------------------
def make_rotated_anchors(H, W, stride, sizes):
    # (x_ctr, y_ctr, w, h, angle) per location, location-major / anchor-minor
    # (flat index p*A + a), matching torchvision-style grid anchor ordering.
    A = sizes.shape[0]
    ys, xs = jnp.meshgrid(jnp.arange(H, dtype=jnp.float32) * stride,
                          jnp.arange(W, dtype=jnp.float32) * stride,
                          indexing="ij")
    centers = jnp.stack([xs, ys], axis=-1).reshape(-1, 2)          # (H*W, 2)
    base = jnp.stack([sizes, sizes, jnp.zeros_like(sizes)], axis=1)  # (A, 3)
    anchors = jnp.concatenate(
        [jnp.repeat(centers, A, axis=0), jnp.tile(base, (H * W, 1))], axis=1)
    return anchors                                                  # (H*W*A, 5)


def filter_proposals(props_cm, scores, pre_nms_top_n, post_nms_top_n,
                     min_size, score_thresh):
    # props_cm: (N, 5, A, HW) channel-major proposals straight from the kernel.
    # scores  : (N, HW*A) sigmoid probabilities, flat index (h*W + w)*A + a.
    N, _, A, HW = props_cm.shape
    K = A * HW
    k_pre = min(pre_nms_top_n, K)
    top_scores, top_idx = jax.lax.top_k(scores, k_pre)        # (N, k_pre)

    # Gather only the top-k boxes from the channel-major slab: flat index
    # p*A + a maps to channel-major offset a*HW + p.  This replaces the old
    # full (5, A, HW) -> (HW*A, 5) transpose (a whole extra HBM pass).
    cm_idx = (top_idx % A) * HW + (top_idx // A)              # (N, k_pre)
    props_flat = props_cm.reshape(N, 5, A * HW)
    gather_idx = jnp.broadcast_to(cm_idx[:, None, :], (N, 5, k_pre))
    top_boxes = jnp.take_along_axis(props_flat, gather_idx, axis=2)
    top_boxes = jnp.transpose(top_boxes, (0, 2, 1))           # (N, k_pre, 5)

    # clip_rotated_boxes_to_image is the identity in the reference module.
    valid = ((top_boxes[..., 2] >= min_size)
             & (top_boxes[..., 3] >= min_size)
             & (top_scores >= score_thresh))
    masked = jnp.where(valid, top_scores, -jnp.inf)

    # TODO(synk): batched_nms_rotated (rotated-box IoU NMS) has no clean
    # Pallas/JAX equivalent; selecting post_nms_top_n boxes by score instead.
    k_post = min(post_nms_top_n, k_pre)
    fin_scores, fin_idx = jax.lax.top_k(masked, k_post)
    fin_boxes = jnp.take_along_axis(top_boxes, fin_idx[:, :, None], axis=1)
    return ([fin_boxes[i] for i in range(N)],
            [fin_scores[i] for i in range(N)])


# ----------------------------------------------------------------------------
# Forward pass
# ----------------------------------------------------------------------------
@functools.partial(jax.jit, static_argnums=(8, 9, 10, 11))
def rotated_rpn_forward(x_nchw, w_conv, b_conv, w_cls, b_cls, w_box, b_box,
                        anchors_per_image, pre_nms_top_n, post_nms_top_n,
                        min_size, score_thresh):
    # Parameters are in PyTorch RPNHead layouts:
    #   w_conv (C, C, 3, 3), b_conv (C,)
    #   w_cls  (A, C, 1, 1), b_cls  (A,)
    #   w_box  (A*6, C, 1, 1) [out channel = a*6 + r], b_box (A*6,)
    N, C, H, W = x_nchw.shape
    A = w_cls.shape[0]
    HW = H * W

    # --- im2col, channel-major (lane axis = H*W), bf16 ----------------------
    # Cast to bf16 BEFORE padding/stacking so the 9x patch slab is built (and
    # written to HBM) at half the bytes.
    x_bf = x_nchw.astype(jnp.bfloat16)
    x_pad = jnp.pad(x_bf, ((0, 0), (0, 0), (1, 1), (1, 1)))
    shifts = [x_pad[:, :, dy:dy + H, dx:dx + W]
              for dy in range(3) for dx in range(3)]
    patches = jnp.stack(shifts, axis=1).reshape(N, 9 * C, HW)

    # 3x3 conv weight -> single im2col matmul weight (C, 9C); column index is
    # (dy*3+dx)*C + c to match the patch slab ordering above.
    w1 = jnp.transpose(w_conv, (0, 2, 3, 1)).reshape(C, 9 * C)
    w1 = w1.astype(jnp.bfloat16)
    b1 = b_conv.reshape(C, 1)

    # Fuse the two 1x1 convs into one (7A, C) matmul. Rows are component-major
    # so the in-kernel decode slices are contiguous row ranges:
    #   [cls_a..., dx_a..., dy_a..., dw_a..., dh_a..., dang_a..., d6_a...]
    wcls = w_cls.reshape(A, C)
    wbox = w_box.reshape(A, 6, C).transpose(1, 0, 2).reshape(6 * A, C)
    w2 = jnp.concatenate([wcls, wbox], axis=0).astype(jnp.bfloat16)
    b2 = jnp.concatenate(
        [b_cls.reshape(A), b_box.reshape(A, 6).T.reshape(6 * A)],
        axis=0).reshape(7 * A, 1)

    # Anchors (HW*A, 5) with flat index p*A + a  ->  channel-major (5, A, HW).
    anchors_cm = anchors_per_image.reshape(HW, A, 5).transpose(2, 1, 0)

    t_hw = _pick_hw_tile(HW)
    props_cm, scores_cm = run_rpn_head_decode(patches, w1, b1, w2, b2,
                                              anchors_cm, t_hw)

    # Scores back to PyTorch flat ordering (h*W + w)*A + a (cheap: A*HW elems).
    scores = jnp.transpose(scores_cm, (0, 2, 1)).reshape(N, HW * A)

    boxes, final_scores = filter_proposals(props_cm, scores, pre_nms_top_n,
                                           post_nms_top_n, min_size,
                                           score_thresh)
    # targets is None -> losses = {}.
    # TODO(synk): training loss path (box_iou_rotated matcher,
    # BalancedPositiveNegativeSampler, box encode, BCE + smooth-L1) is out of
    # scope for the inference kernel.
    losses = {}
    return boxes, final_scores, losses


# ----------------------------------------------------------------------------
# Main
# ----------------------------------------------------------------------------
if __name__ == "__main__":
    N, C, H, W = 2, 16, 32, 32
    A = 3
    reg = 6
    img_size = 256
    stride = img_size // H

    key = jax.random.PRNGKey(0)
    k_x, k_wc, k_bc, k_wcls, k_bcls, k_wbox, k_bbox = jax.random.split(key, 7)

    # Feature map in PyTorch NCHW layout.
    x_nchw = jax.random.normal(k_x, (N, C, H, W), jnp.float32)

    # Deterministic synthetic parameters in PyTorch RPNHead layouts.
    w_conv = 0.05 * jax.random.normal(k_wc, (C, C, 3, 3), jnp.float32)
    b_conv = 0.05 * jax.random.normal(k_bc, (C,), jnp.float32)
    w_cls = 0.05 * jax.random.normal(k_wcls, (A, C, 1, 1), jnp.float32)
    b_cls = 0.05 * jax.random.normal(k_bcls, (A,), jnp.float32)
    w_box = 0.05 * jax.random.normal(k_wbox, (A * reg, C, 1, 1), jnp.float32)
    b_box = 0.05 * jax.random.normal(k_bbox, (A * reg,), jnp.float32)

    anchor_sizes = jnp.array([16.0, 32.0, 64.0], jnp.float32)
    anchors_per_image = make_rotated_anchors(H, W, float(stride), anchor_sizes)

    boxes, scores, losses = rotated_rpn_forward(
        x_nchw, w_conv, b_conv, w_cls, b_cls, w_box, b_box,
        anchors_per_image,
        200,      # pre_nms_top_n (testing)
        50,       # post_nms_top_n (testing)
        0.001,    # min_size
        0.0)      # score_thresh

    jax.block_until_ready(boxes)
    jax.block_until_ready(scores)

    assert len(boxes) == N and boxes[0].shape == (50, 5)
    assert len(scores) == N and scores[0].shape == (50,)
    assert losses == {}
    print("KERNEL_OK")
</pallas_src>

<mosaic_0001>
module attributes {stable_mosaic.version = 11 : i64} {
  func.func @rpn_fused_kernel(%arg0: i32, %arg1: i32, %arg2: memref<1x144x512xbf16, #tpu.memory_space<vmem>>, %arg3: memref<16x144xbf16, #tpu.memory_space<vmem>>, %arg4: memref<16x1xf32, #tpu.memory_space<vmem>>, %arg5: memref<21x16xbf16, #tpu.memory_space<vmem>>, %arg6: memref<21x1xf32, #tpu.memory_space<vmem>>, %arg7: memref<5x3x512xf32, #tpu.memory_space<vmem>>, %arg8: memref<1x5x3x512xf32, #tpu.memory_space<vmem>>, %arg9: memref<1x3x512xf32, #tpu.memory_space<vmem>>) attributes {dimension_semantics = [#tpu.dimension_semantics<parallel>, #tpu.dimension_semantics<parallel>], iteration_bounds = array<i64: 2, 2>, scalar_prefetch = 0 : i64, scratch_operands = 0 : i64, tpu.core_type = #tpu.core_type<tc>, window_params = [{transform_indices = @transform_0, window_bounds = array<i64: 1, 144, 512>}, {pipeline_mode = #tpu.pipeline_mode<synchronous>, transform_indices = @transform_1, window_bounds = array<i64: 16, 144>}, {pipeline_mode = #tpu.pipeline_mode<synchronous>, transform_indices = @transform_2, window_bounds = array<i64: 16, 1>}, {pipeline_mode = #tpu.pipeline_mode<synchronous>, transform_indices = @transform_3, window_bounds = array<i64: 21, 16>}, {pipeline_mode = #tpu.pipeline_mode<synchronous>, transform_indices = @transform_4, window_bounds = array<i64: 21, 1>}, {transform_indices = @transform_5, window_bounds = array<i64: 5, 3, 512>}, {transform_indices = @transform_6, window_bounds = array<i64: 1, 5, 3, 512>}, {transform_indices = @transform_7, window_bounds = array<i64: 1, 3, 512>}]} {
    %c0 = arith.constant 0 : index
    %c0_0 = arith.constant 0 : index
    %c0_1 = arith.constant 0 : index
    %0 = vector.load %arg2[%c0, %c0_0, %c0_1] : memref<1x144x512xbf16, #tpu.memory_space<vmem>>, vector<1x144x512xbf16>
    %1 = vector.shape_cast %0 : vector<1x144x512xbf16> to vector<144x512xbf16>
    %c0_2 = arith.constant 0 : index
    %c0_3 = arith.constant 0 : index
    %2 = vector.load %arg3[%c0_2, %c0_3] : memref<16x144xbf16, #tpu.memory_space<vmem>>, vector<16x144xbf16>
    %cst = arith.constant dense<0.000000e+00> : vector<16x512xf32>
    %3 = tpu.matmul %2, %1, %cst {dimension_numbers = #tpu.dot_dimension_numbers<[1], [0], [0], [1], [0, 0, 1, 1], [], []>} : vector<16x144xbf16>, vector<144x512xbf16>, vector<16x512xf32> -> vector<16x512xf32>
    %c0_4 = arith.constant 0 : index
    %c0_5 = arith.constant 0 : index
    %4 = vector.load %arg4[%c0_4, %c0_5] : memref<16x1xf32, #tpu.memory_space<vmem>>, vector<16x1xf32>
    %5 = vector.broadcast %4 : vector<16x1xf32> to vector<16x512xf32>
    %6 = arith.addf %3, %5 : vector<16x512xf32>
    %cst_6 = arith.constant 0.000000e+00 : f32
    %7 = vector.broadcast %cst_6 : f32 to vector<16x512xf32>
    %8 = arith.maximumf %6, %7 : vector<16x512xf32>
    %c0_7 = arith.constant 0 : index
    %c0_8 = arith.constant 0 : index
    %9 = vector.load %arg5[%c0_7, %c0_8] : memref<21x16xbf16, #tpu.memory_space<vmem>>, vector<21x16xbf16>
    %10 = arith.truncf %8 : vector<16x512xf32> to vector<16x512xbf16>
    %cst_9 = arith.constant dense<0.000000e+00> : vector<21x512xf32>
    %11 = tpu.matmul %9, %10, %cst_9 {dimension_numbers = #tpu.dot_dimension_numbers<[1], [0], [0], [1], [0, 0, 1, 1], [], []>} : vector<21x16xbf16>, vector<16x512xbf16>, vector<21x512xf32> -> vector<21x512xf32>
    %c0_10 = arith.constant 0 : index
    %c0_11 = arith.constant 0 : index
    %12 = vector.load %arg6[%c0_10, %c0_11] : memref<21x1xf32, #tpu.memory_space<vmem>>, vector<21x1xf32>
    %13 = vector.broadcast %12 : vector<21x1xf32> to vector<21x512xf32>
    %14 = arith.addf %11, %13 : vector<21x512xf32>
    %15 = vector.extract_strided_slice %14 {offsets = [0, 0], sizes = [3, 512], strides = [1, 1]} : vector<21x512xf32> to vector<3x512xf32>
    %16 = vector.extract_strided_slice %14 {offsets = [3, 0], sizes = [3, 512], strides = [1, 1]} : vector<21x512xf32> to vector<3x512xf32>
    %17 = vector.extract_strided_slice %14 {offsets = [6, 0], sizes = [3, 512], strides = [1, 1]} : vector<21x512xf32> to vector<3x512xf32>
    %18 = vector.extract_strided_slice %14 {offsets = [9, 0], sizes = [3, 512], strides = [1, 1]} : vector<21x512xf32> to vector<3x512xf32>
    %19 = vector.extract_strided_slice %14 {offsets = [12, 0], sizes = [3, 512], strides = [1, 1]} : vector<21x512xf32> to vector<3x512xf32>
    %20 = vector.extract_strided_slice %14 {offsets = [15, 0], sizes = [3, 512], strides = [1, 1]} : vector<21x512xf32> to vector<3x512xf32>
    %c0_12 = arith.constant 0 : index
    %c0_13 = arith.constant 0 : index
    %c0_14 = arith.constant 0 : index
    %21 = vector.load %arg7[%c0_12, %c0_13, %c0_14] : memref<5x3x512xf32, #tpu.memory_space<vmem>>, vector<1x3x512xf32>
    %22 = vector.shape_cast %21 : vector<1x3x512xf32> to vector<3x512xf32>
    %c1 = arith.constant 1 : index
    %c0_15 = arith.constant 0 : index
    %c0_16 = arith.constant 0 : index
    %23 = vector.load %arg7[%c1, %c0_15, %c0_16] : memref<5x3x512xf32, #tpu.memory_space<vmem>>, vector<1x3x512xf32>
    %24 = vector.shape_cast %23 : vector<1x3x512xf32> to vector<3x512xf32>
    %c2 = arith.constant 2 : index
    %c0_17 = arith.constant 0 : index
    %c0_18 = arith.constant 0 : index
    %25 = vector.load %arg7[%c2, %c0_17, %c0_18] : memref<5x3x512xf32, #tpu.memory_space<vmem>>, vector<1x3x512xf32>
    %26 = vector.shape_cast %25 : vector<1x3x512xf32> to vector<3x512xf32>
    %c3 = arith.constant 3 : index
    %c0_19 = arith.constant 0 : index
    %c0_20 = arith.constant 0 : index
    %27 = vector.load %arg7[%c3, %c0_19, %c0_20] : memref<5x3x512xf32, #tpu.memory_space<vmem>>, vector<1x3x512xf32>
    %28 = vector.shape_cast %27 : vector<1x3x512xf32> to vector<3x512xf32>
    %c4 = arith.constant 4 : index
    %c0_21 = arith.constant 0 : index
    %c0_22 = arith.constant 0 : index
    %29 = vector.load %arg7[%c4, %c0_21, %c0_22] : memref<5x3x512xf32, #tpu.memory_space<vmem>>, vector<1x3x512xf32>
    %30 = vector.shape_cast %29 : vector<1x3x512xf32> to vector<3x512xf32>
    %31 = arith.mulf %16, %26 : vector<3x512xf32>
    %32 = arith.addf %31, %22 : vector<3x512xf32>
    %c0_23 = arith.constant 0 : index
    %c0_24 = arith.constant 0 : index
    %c0_25 = arith.constant 0 : index
    %c0_26 = arith.constant 0 : index
    %33 = vector.load %arg8[%c0_23, %c0_24, %c0_25, %c0_26] : memref<1x5x3x512xf32, #tpu.memory_space<vmem>>, vector<1x1x3x512xf32>
    %34 = vector.shape_cast %33 : vector<1x1x3x512xf32> to vector<3x512xf32>
    %35 = vector.shape_cast %32 : vector<3x512xf32> to vector<1x1x3x512xf32>
    tpu.vector_store %arg8[%c0_23, %c0_24, %c0_25, %c0_26], %35 {strides = array<i32>} : memref<1x5x3x512xf32, #tpu.memory_space<vmem>>, vector<1x1x3x512xf32>,
    %36 = arith.mulf %17, %28 : vector<3x512xf32>
    %37 = arith.addf %36, %24 : vector<3x512xf32>
    %c0_27 = arith.constant 0 : index
    %c1_28 = arith.constant 1 : index
    %c0_29 = arith.constant 0 : index
    %c0_30 = arith.constant 0 : index
    %38 = vector.load %arg8[%c0_27, %c1_28, %c0_29, %c0_30] : memref<1x5x3x512xf32, #tpu.memory_space<vmem>>, vector<1x1x3x512xf32>
    %39 = vector.shape_cast %38 : vector<1x1x3x512xf32> to vector<3x512xf32>
    %40 = vector.shape_cast %37 : vector<3x512xf32> to vector<1x1x3x512xf32>
    tpu.vector_store %arg8[%c0_27, %c1_28, %c0_29, %c0_30], %40 {strides = array<i32>} : memref<1x5x3x512xf32, #tpu.memory_space<vmem>>, vector<1x1x3x512xf32>,
    %cst_31 = arith.constant 4.13516665 : f32
    %41 = vector.broadcast %cst_31 : f32 to vector<3x512xf32>
    %42 = arith.minimumf %18, %41 : vector<3x512xf32>
    %43 = math.exp %42 : vector<3x512xf32>
    %44 = arith.mulf %26, %43 : vector<3x512xf32>
    %c0_32 = arith.constant 0 : index
    %c2_33 = arith.constant 2 : index
    %c0_34 = arith.constant 0 : index
    %c0_35 = arith.constant 0 : index
    %45 = vector.load %arg8[%c0_32, %c2_33, %c0_34, %c0_35] : memref<1x5x3x512xf32, #tpu.memory_space<vmem>>, vector<1x1x3x512xf32>
    %46 = vector.shape_cast %45 : vector<1x1x3x512xf32> to vector<3x512xf32>
    %47 = vector.shape_cast %44 : vector<3x512xf32> to vector<1x1x3x512xf32>
    tpu.vector_store %arg8[%c0_32, %c2_33, %c0_34, %c0_35], %47 {strides = array<i32>} : memref<1x5x3x512xf32, #tpu.memory_space<vmem>>, vector<1x1x3x512xf32>,
    %cst_36 = arith.constant 4.13516665 : f32
    %48 = vector.broadcast %cst_36 : f32 to vector<3x512xf32>
    %49 = arith.minimumf %19, %48 : vector<3x512xf32>
    %50 = math.exp %49 : vector<3x512xf32>
    %51 = arith.mulf %28, %50 : vector<3x512xf32>
    %c0_37 = arith.constant 0 : index
    %c3_38 = arith.constant 3 : index
    %c0_39 = arith.constant 0 : index
    %c0_40 = arith.constant 0 : index
    %52 = vector.load %arg8[%c0_37, %c3_38, %c0_39, %c0_40] : memref<1x5x3x512xf32, #tpu.memory_space<vmem>>, vector<1x1x3x512xf32>
    %53 = vector.shape_cast %52 : vector<1x1x3x512xf32> to vector<3x512xf32>
    %54 = vector.shape_cast %51 : vector<3x512xf32> to vector<1x1x3x512xf32>
    tpu.vector_store %arg8[%c0_37, %c3_38, %c0_39, %c0_40], %54 {strides = array<i32>} : memref<1x5x3x512xf32, #tpu.memory_space<vmem>>, vector<1x1x3x512xf32>,
    %55 = arith.addf %30, %20 : vector<3x512xf32>
    %c0_41 = arith.constant 0 : index
    %c4_42 = arith.constant 4 : index
    %c0_43 = arith.constant 0 : index
    %c0_44 = arith.constant 0 : index
    %56 = vector.load %arg8[%c0_41, %c4_42, %c0_43, %c0_44] : memref<1x5x3x512xf32, #tpu.memory_space<vmem>>, vector<1x1x3x512xf32>
    %57 = vector.shape_cast %56 : vector<1x1x3x512xf32> to vector<3x512xf32>
    %58 = vector.shape_cast %55 : vector<3x512xf32> to vector<1x1x3x512xf32>
    tpu.vector_store %arg8[%c0_41, %c4_42, %c0_43, %c0_44], %58 {strides = array<i32>} : memref<1x5x3x512xf32, #tpu.memory_space<vmem>>, vector<1x1x3x512xf32>,
    %cst_45 = arith.constant 0.000000e+00 : f32
    %59 = vector.broadcast %cst_45 : f32 to vector<3x512xf32>
    %60 = arith.subf %59, %15 : vector<3x512xf32>
    %61 = math.exp %60 : vector<3x512xf32>
    %cst_46 = arith.constant 1.000000e+00 : f32
    %62 = vector.broadcast %cst_46 : f32 to vector<3x512xf32>
    %63 = arith.addf %62, %61 : vector<3x512xf32>
    %cst_47 = arith.constant 1.000000e+00 : f32
    %64 = vector.broadcast %cst_47 : f32 to vector<3x512xf32>
    %65 = arith.divf %64, %63 : vector<3x512xf32>
    %c0_48 = arith.constant 0 : index
    %c0_49 = arith.constant 0 : index
    %c0_50 = arith.constant 0 : index
    %66 = vector.load %arg9[%c0_48, %c0_49, %c0_50] : memref<1x3x512xf32, #tpu.memory_space<vmem>>, vector<1x3x512xf32>
    %67 = vector.shape_cast %66 : vector<1x3x512xf32> to vector<3x512xf32>
    %68 = vector.shape_cast %65 : vector<3x512xf32> to vector<1x3x512xf32>
    tpu.vector_store %arg9[%c0_48, %c0_49, %c0_50], %68 {strides = array<i32>} : memref<1x3x512xf32, #tpu.memory_space<vmem>>, vector<1x3x512xf32>,
    return
  }
  func.func @transform_0(%arg0: i32, %arg1: i32) -> (i32, i32, i32) {
    %c0_i32 = arith.constant 0 : i32
    %c0_i32_0 = arith.constant 0 : i32
    return %arg0, %c0_i32, %arg1 : i32, i32, i32
  }
  func.func @transform_1(%arg0: i32, %arg1: i32) -> (i32, i32) {
    %c0_i32 = arith.constant 0 : i32
    %c0_i32_0 = arith.constant 0 : i32
    %c0_i32_1 = arith.constant 0 : i32
    return %c0_i32, %c0_i32_0 : i32, i32
  }
  func.func @transform_2(%arg0: i32, %arg1: i32) -> (i32, i32) {
    %c0_i32 = arith.constant 0 : i32
    %c0_i32_0 = arith.constant 0 : i32
    %c0_i32_1 = arith.constant 0 : i32
    return %c0_i32, %c0_i32_0 : i32, i32
  }
  func.func @transform_3(%arg0: i32, %arg1: i32) -> (i32, i32) {
    %c0_i32 = arith.constant 0 : i32
    %c0_i32_0 = arith.constant 0 : i32
    %c0_i32_1 = arith.constant 0 : i32
    return %c0_i32, %c0_i32_0 : i32, i32
  }
  func.func @transform_4(%arg0: i32, %arg1: i32) -> (i32, i32) {
    %c0_i32 = arith.constant 0 : i32
    %c0_i32_0 = arith.constant 0 : i32
    %c0_i32_1 = arith.constant 0 : i32
    return %c0_i32, %c0_i32_0 : i32, i32
  }
  func.func @transform_5(%arg0: i32, %arg1: i32) -> (i32, i32, i32) {
    %c0_i32 = arith.constant 0 : i32
    %c0_i32_0 = arith.constant 0 : i32
    %c0_i32_1 = arith.constant 0 : i32
    return %c0_i32, %c0_i32_0, %arg1 : i32, i32, i32
  }
  func.func @transform_6(%arg0: i32, %arg1: i32) -> (i32, i32, i32, i32) {
    %c0_i32 = arith.constant 0 : i32
    %c0_i32_0 = arith.constant 0 : i32
    %c0_i32_1 = arith.constant 0 : i32
    return %arg0, %c0_i32, %c0_i32_0, %arg1 : i32, i32, i32, i32
  }
  func.func @transform_7(%arg0: i32, %arg1: i32) -> (i32, i32, i32) {
    %c0_i32 = arith.constant 0 : i32
    %c0_i32_0 = arith.constant 0 : i32
    return %arg0, %c0_i32, %arg1 : i32, i32, i32
  }
}

</mosaic_0001>

<bundles_post_ra>
// kernel: rotated_rpn_forward.1
= control target key start
LH: loop header
LB: loop body
LE: loop exit
PB: predicated region body
PF: predicated region fallthrough
CT: control target
= control target key end

     0   :  { %s1947_s24 = smov 0   ;;  %s1949_s25 = smov 0   ;;  %s2628_s0 = inlined_call_operand.vmem [shape: bf16[2,144,1024], index: 0, kind: input, shape index: {}]   ;;  %s2629_s1 = inlined_call_operand.vmem [shape: bf16[16,144], index: 1, kind: input, shape index: {}]   ;;  %s2630_s2 = inlined_call_operand.vmem [shape: f32[16,1], index: 2, kind: input, shape index: {}]   ;;  %s2631_s3 = inlined_call_operand.vmem [shape: bf16[21,16], index: 3, kind: input, shape index: {}]   ;;  %s2632_s4 = inlined_call_operand.vmem [shape: f32[21,1], index: 4, kind: input, shape index: {}]   ;;  %s2633_s5 = inlined_call_operand.vmem [shape: f32[5,3,1024], index: 5, kind: input, shape index: {}]   ;;  %s2634_s6 = inlined_call_operand.vmem [shape: f32[2,5,3,1024], index: 6, kind: output, shape index: {0}]   ;;  %s2635_s7 = inlined_call_operand.vmem [shape: f32[2,3,1024], index: 7, kind: output, shape index: {1}]  }
   0x1   :  { %s1951_s26 = smov 0   ;;  %s1953_s27 = smov 0  }
   0x2   :  { %s1955_s28 = smov 0   ;;  %s1957_s29 = smov 0  }
   0x3   :  { %s1959_s30 = smov 0   ;;  %s1961_s8 = smov 0  }
   0x4   :  { %s1963_s9 = smov 0  }
   0x5 LB: > { %s1477_s10 = sadd.s32 4294967295, %s1904_s9   ;;  %s27_s11 = sadd.s32 1, %s1896_s30  ;;  %s1904_s9 = sphi %s1963_s9, %s18_s9   ;;  %s1900_s8 = sphi %s1961_s8, %s2666_s8   ;;  %s1896_s30 = sphi %s1959_s30, %s2665_s30   ;;  %s1892_s29 = sphi %s1957_s29, %s2664_s29   ;;  %s1888_s28 = sphi %s1955_s28, %s2663_s28   ;;  %s1884_s27 = sphi %s1953_s27, %s2662_s27   ;;  %s1880_s26 = sphi %s1951_s26, %s2661_s26   ;;  %s1876_s25 = sphi %s1949_s25, %s2660_s25   ;;  %s1872_s24 = sphi %s1947_s24, %s2659_s24  }
   0x6   : > { %p28_p0 = scmp.ge.s32.totalorder %s27_s11, 2  ;;  %s30_s12 = sadd.s32 1, %s1900_s8 }
   0x7   : > { %s39_s13 = sadd.s32 1, %s1884_s27  ;;  %p46_p1 = scmp.ne.s32.totalorder %s1884_s27, %s1880_s26 }
   0x8   : > { %s2668_s11 = smov (%p28_p0, %s27_s11), 0  ;;  %s2670_s12 = smov (!%p28_p0, %s30_s12), %s1900_s8 }
   0x9   : > { %2638 = sst [smem:[#allocation5_spill]] %s2668_s11  ;;  %s35_s14 = ssub.s32 %s1896_s30, %s2668_s11 }
   0xa   : > { %p47_p2 = scmp.eq.s32.totalorder %s1904_s9, 0  ;;  %p32_p3 = scmp.ge.s32.totalorder %s2670_s12, 2 }
   0xb   : > { %p147_p4 = scmp.eq.s32.totalorder %s35_s14, 0  ;;  %s149_s16 = sadd.s32 1, %s1876_s25 }
   0xc   : > { %p2007_p5 = por %p47_p2, %p46_p1  ;;  %s2672_s12 = smov (%p32_p3, %s2670_s12), 0 }
   0xd   : > { %2640 = sst [smem:[#allocation6_spill]] %s2672_s12  ;;  %s34_s18 = ssub.s32 %s1900_s8, %s2672_s12 }
   0xe   : > { %s2015_s17 = scalar_select %p147_p4, %s1876_s25, %s149_s16  }
   0xf   : > { %p156_p6 = scmp.ne.s32.totalorder %s1876_s25, %s1872_s24  ;;  %s36_s19 = sor.u32 %s35_s14, %s34_s18 }
  0x10   : > { %p188_p7 = scmp.eq.s32.totalorder %s1477_s10, 3  ;;  %p37_p8 = scmp.eq.s32.totalorder %s36_s19, 0 }
  0x11   : > { %p2021_p9 = por %p156_p6, %p47_p2  ;;  %p1480_p11 = scmp.ge.s32.totalorder %s1904_s9, 4 }
  0x12   : > { %p2028_p10 = por %p188_p7, %p46_p1 }
  0x13   : > { %s2033_s22 = scalar_select %p37_p8, %s1884_s27, %s39_s13  }
  0x14   : > { %250 = sbr.rel (%p1480_p11) target bundleno = 83 (0x53), region = 32 }
  0x19   : > { %253 = sbr.rel (!%p2007_p5) target bundleno = 69 (0x45), region = 36  ;;  %s255_s23 = sand.u32 (%p2007_p5), 1, %s1884_s27  }
  0x1a   : > { %s1727_s10 = smul.u32 (%p2007_p5), 288, %s255_s23  ;;  %s1481_s14 = sshll.u32 (%p2007_p5), %s1896_s30, 2 }
  0x1b   : > { %s1728_s16 = smul.u32 (%p2007_p5), 144, %s1900_s8 }
  0x1c   : > { %s2049_s15 = scalar_lea.vmem (%p2007_p5), [#allocation2], %s1727_s10 }
  0x1d   : > { %s260_s18 = sadd.s32 (%p2007_p5), %s1728_s16, %s1481_s14 }
  0x1e   : > { %s1482_s19 = sshll.u32 %s260_s18, 2 }
  0x1f   : > { %s2044_s13 = scalar_lea.vmem %s2628_s0, %s1482_s19 }
  0x20   : > { %v275_v0 = vld [vmem:[%s2044_s13] sm:$0xff]  ;;  %v277_v1 = vld [vmem:[%s2044_s13 + $0x8] sm:$0xff] }
  0x21   : > { %v279_v2 = vld [vmem:[%s2044_s13 + $0x20] sm:$0xff]  ;;  %276 = vst [vmem:[%s2049_s15] sm:$0xff] %v275_v0  ;;  %v281_v3 = vld [vmem:[%s2044_s13 + $0x28] sm:$0xff] }
  0x22   : > { %278 = vst [vmem:[%s2049_s15 + $0x8] sm:$0xff] %v277_v1  ;;  %v283_v4 = vld [vmem:[%s2044_s13 + $0x40] sm:$0xff]  ;;  %v285_v5 = vld [vmem:[%s2044_s13 + $0x48] sm:$0xff] }
  0x23   : > { %280 = vst [vmem:[%s2049_s15 + $0x10] sm:$0xff] %v279_v2  ;;  %v287_v6 = vld [vmem:[%s2044_s13 + $0x60] sm:$0xff]  ;;  %v289_v7 = vld [vmem:[%s2044_s13 + $0x68] sm:$0xff] }
  0x24   : > { %282 = vst [vmem:[%s2049_s15 + $0x18] sm:$0xff] %v281_v3  ;;  %v291_v8 = vld [vmem:[%s2044_s13 + $0x80] sm:$0xff]  ;;  %v293_v9 = vld [vmem:[%s2044_s13 + $0x88] sm:$0xff] }
  0x25   : > { %284 = vst [vmem:[%s2049_s15 + $0x20] sm:$0xff] %v283_v4  ;;  %v295_v10 = vld [vmem:[%s2044_s13 + $0xa0] sm:$0xff]  ;;  %v297_v11 = vld [vmem:[%s2044_s13 + $0xa8] sm:$0xff] }
  0x26   : > { %286 = vst [vmem:[%s2049_s15 + $0x28] sm:$0xff] %v285_v5  ;;  %v299_v12 = vld [vmem:[%s2044_s13 + $0xc0] sm:$0xff]  ;;  %v301_v13 = vld [vmem:[%s2044_s13 + $0xc8] sm:$0xff] }
  0x27   : > { %288 = vst [vmem:[%s2049_s15 + $0x30] sm:$0xff] %v287_v6  ;;  %v303_v14 = vld [vmem:[%s2044_s13 + $0xe0] sm:$0xff]  ;;  %v305_v15 = vld [vmem:[%s2044_s13 + $0xe8] sm:$0xff] }
  0x28   : > { %290 = vst [vmem:[%s2049_s15 + $0x38] sm:$0xff] %v289_v7  ;;  %v307_v16 = vld [vmem:[%s2044_s13 + $0x100] sm:$0xff]  ;;  %v309_v17 = vld [vmem:[%s2044_s13 + $0x108] sm:$0xff] }
  0x29   : > { %292 = vst [vmem:[%s2049_s15 + $0x40] sm:$0xff] %v291_v8  ;;  %v311_v18 = vld [vmem:[%s2044_s13 + $0x120] sm:$0xff]  ;;  %v313_v19 = vld [vmem:[%s2044_s13 + $0x128] sm:$0xff] }
  0x2a   : > { %294 = vst [vmem:[%s2049_s15 + $0x48] sm:$0xff] %v293_v9  ;;  %v315_v20 = vld [vmem:[%s2044_s13 + $0x140] sm:$0xff]  ;;  %v317_v21 = vld [vmem:[%s2044_s13 + $0x148] sm:$0xff] }
  0x2b   : > { %296 = vst [vmem:[%s2049_s15 + $0x50] sm:$0xff] %v295_v10  ;;  %v319_v22 = vld [vmem:[%s2044_s13 + $0x160] sm:$0xff]  ;;  %v321_v23 = vld [vmem:[%s2044_s13 + $0x168] sm:$0xff] }
  0x2c   : > { %298 = vst [vmem:[%s2049_s15 + $0x58] sm:$0xff] %v297_v11  ;;  %v323_v24 = vld [vmem:[%s2044_s13 + $0x180] sm:$0xff]  ;;  %v325_v25 = vld [vmem:[%s2044_s13 + $0x188] sm:$0xff] }
  0x2d   : > { %300 = vst [vmem:[%s2049_s15 + $0x60] sm:$0xff] %v299_v12  ;;  %v327_v26 = vld [vmem:[%s2044_s13 + $0x1a0] sm:$0xff]  ;;  %v329_v27 = vld [vmem:[%s2044_s13 + $0x1a8] sm:$0xff] }
  0x2e   : > { %302 = vst [vmem:[%s2049_s15 + $0x68] sm:$0xff] %v301_v13  ;;  %v331_v28 = vld [vmem:[%s2044_s13 + $0x1c0] sm:$0xff]  ;;  %v333_v29 = vld [vmem:[%s2044_s13 + $0x1c8] sm:$0xff] }
  0x2f   : > { %304 = vst [vmem:[%s2049_s15 + $0x70] sm:$0xff] %v303_v14  ;;  %v335_v30 = vld [vmem:[%s2044_s13 + $0x1e0] sm:$0xff]  ;;  %v337_v31 = vld [vmem:[%s2044_s13 + $0x1e8] sm:$0xff] }
  0x30   : > { %306 = vst [vmem:[%s2049_s15 + $0x78] sm:$0xff] %v305_v15  ;;  %v339_v32 = vld [vmem:[%s2044_s13 + $0x200] sm:$0xff]  ;;  %v341_v33 = vld [vmem:[%s2044_s13 + $0x208] sm:$0xff] }
  0x31   : > { %308 = vst [vmem:[%s2049_s15 + $0x80] sm:$0xff] %v307_v16  ;;  %v343_v34 = vld [vmem:[%s2044_s13 + $0x220] sm:$0xff]  ;;  %v345_v35 = vld [vmem:[%s2044_s13 + $0x228] sm:$0xff] }
  0x32   : > { %310 = vst [vmem:[%s2049_s15 + $0x88] sm:$0xff] %v309_v17 }
  0x33   : > { %312 = vst [vmem:[%s2049_s15 + $0x90] sm:$0xff] %v311_v18 }
  0x34   : > { %314 = vst [vmem:[%s2049_s15 + $0x98] sm:$0xff] %v313_v19 }
  0x35   : > { %316 = vst [vmem:[%s2049_s15 + $0xa0] sm:$0xff] %v315_v20 }
  0x36   : > { %318 = vst [vmem:[%s2049_s15 + $0xa8] sm:$0xff] %v317_v21 }
  0x37   : > { %320 = vst [vmem:[%s2049_s15 + $0xb0] sm:$0xff] %v319_v22 }
  0x38   : > { %322 = vst [vmem:[%s2049_s15 + $0xb8] sm:$0xff] %v321_v23 }
  0x39   : > { %324 = vst [vmem:[%s2049_s15 + $0xc0] sm:$0xff] %v323_v24 }
  0x3a   : > { %326 = vst [vmem:[%s2049_s15 + $0xc8] sm:$0xff] %v325_v25 }
  0x3b   : > { %328 = vst [vmem:[%s2049_s15 + $0xd0] sm:$0xff] %v327_v26 }
  0x3c   : > { %330 = vst [vmem:[%s2049_s15 + $0xd8] sm:$0xff] %v329_v27 }
  0x3d   : > { %332 = vst [vmem:[%s2049_s15 + $0xe0] sm:$0xff] %v331_v28 }
  0x3e   : > { %334 = vst [vmem:[%s2049_s15 + $0xe8] sm:$0xff] %v333_v29 }
  0x3f   : > { %336 = vst [vmem:[%s2049_s15 + $0xf0] sm:$0xff] %v335_v30 }
  0x40   : > { %338 = vst [vmem:[%s2049_s15 + $0xf8] sm:$0xff] %v337_v31 }
  0x41   : > { %340 = vst [vmem:[%s2049_s15 + $0x100] sm:$0xff] %v339_v32 }
  0x42   : > { %342 = vst [vmem:[%s2049_s15 + $0x108] sm:$0xff] %v341_v33 }
  0x43   : > { %344 = vst [vmem:[%s2049_s15 + $0x110] sm:$0xff] %v343_v34 }
  0x44   : > { %346 = vst [vmem:[%s2049_s15 + $0x118] sm:$0xff] %v345_v35 }
  0x45 PF: > { %352 = sbr.rel (!%p2021_p9) target bundleno = 83 (0x53), region = 59  ;;  %s354_s11 = sand.u32 (%p2021_p9), 1, %s1876_s25  }
  0x46   : > { %s1687_s12 = sshll.u32 (%p2021_p9), %s1896_s30, 4  ;;  %s1729_s23 = smul.u32 (%p2021_p9), 80, %s354_s11 }
  0x47   : > { %s359_s16 = scalar_lea.vmem (%p2021_p9), %s2633_s5, %s1687_s12 }
  0x48   : > { %v372_v36 = vld [vmem:[%s359_s16] sm:$0xff] (%p2021_p9)  ;;  %v374_v37 = vld [vmem:[%s359_s16 + $0x8] sm:$0xff] (%p2021_p9)  ;;  %s356_s18 = scalar_lea.vmem (%p2021_p9), [#allocation3], %s1729_s23 }
  0x49   : > { %v376_v38 = vld [vmem:[%s359_s16 + $0x20] sm:$0xff] (%p2021_p9)  ;;  %373 = vst [vmem:[%s356_s18] sm:$0xff] (%p2021_p9), %v372_v36  ;;  %v378_v39 = vld [vmem:[%s359_s16 + $0x28] sm:$0xff] (%p2021_p9) }
  0x4a   : > { %375 = vst [vmem:[%s356_s18 + $0x8] sm:$0xff] %v374_v37  ;;  %v380_v40 = vld [vmem:[%s359_s16 + $0x40] sm:$0xff]  ;;  %v382_v41 = vld [vmem:[%s359_s16 + $0x48] sm:$0xff] }
  0x4b   : > { %377 = vst [vmem:[%s356_s18 + $0x10] sm:$0xff] %v376_v38  ;;  %v384_v42 = vld [vmem:[%s359_s16 + $0x60] sm:$0xff]  ;;  %v386_v43 = vld [vmem:[%s359_s16 + $0x68] sm:$0xff] }
  0x4c   : > { %379 = vst [vmem:[%s356_s18 + $0x18] sm:$0xff] %v378_v39  ;;  %v388_v44 = vld [vmem:[%s359_s16 + $0x80] sm:$0xff]  ;;  %v390_v45 = vld [vmem:[%s359_s16 + $0x88] sm:$0xff] }
  0x4d   : > { %381 = vst [vmem:[%s356_s18 + $0x20] sm:$0xff] %v380_v40 }
  0x4e   : > { %383 = vst [vmem:[%s356_s18 + $0x28] sm:$0xff] %v382_v41 }
  0x4f   : > { %385 = vst [vmem:[%s356_s18 + $0x30] sm:$0xff] %v384_v42 }
  0x50   : > { %387 = vst [vmem:[%s356_s18 + $0x38] sm:$0xff] %v386_v43 }
  0x51   : > { %389 = vst [vmem:[%s356_s18 + $0x40] sm:$0xff] %v388_v44 }
  0x52   : > { %391 = vst [vmem:[%s356_s18 + $0x48] sm:$0xff] %v390_v45 }
  0x53 PF: > { %p1485_p12 = scmp.ge.s32.totalorder %s1904_s9, 1  ;;  %p396_p13 = scmp.lt.s32.totalorder %s1904_s9, 5 }
  0x55   : > { %p397_p0 = pnand %p1485_p12, %p396_p13 }
  0x56   : > { %s403_s20 = sand.u32 (!%p397_p0), 1, %s1880_s26   ;;  %s410_s12 = sand.u32 (!%p397_p0), 1, %s1872_s24  }
  0x57   : > { %400 = sbr.rel (%p397_p0) target bundleno = 482 (0x1e2), region = 82  ;;  %p457_p1 = scmp.lt.s32.totalorder (!%p397_p0), %s1892_s29, 1 }
  0x58   : > { %s1730_s19 = smul.u32 (!%p397_p0), 288, %s403_s20 }
  0x59   : > { %s2353_s24 = smul.u32 (!%p397_p0), 80, %s403_s20  ;;  %s2410_s20 = sshll.u32 (!%p397_p0), %s1888_s28, 2 }
  0x5a   : > { %s2138_s23 = scalar_lea.vmem (!%p397_p0), [#allocation2], %s1730_s19  ;;  %p459_p2 = scmp.lt.s32.totalorder (!%p397_p0), %s2410_s20, 7 }
  0x5b   : > { %s2384_s26 = scalar_lea.vmem (!%p397_p0), [#allocation4], %s2353_s24 }
  0x5c   : > { %v1724_v46 = vld [vmem:[%s2629_s1 + $0x4] sm:$0xf]  ;;  %v1493_v47 = vld [vmem:[%s2629_s1 + $0x8] sm:$0xf0]  ;;  %vm706_vm0 = vcmask 130048   ;;  %vm1003_vm1 = vcmask 1043456  }
  0x5d   : > { %v1611_v48 = vld [vmem:[%s2138_s23 + $0xe0] sm:$0xf]  ;;  %v1718_v49 = vld [vmem:[%s2138_s23 + $0xec] sm:$0xf0]  ;;  %v1716_v53 = vld [vmem:[%s2138_s23 + $0xe4] sm:$0xf]  ;;  %v2152_v0 = vor.u32 %v1724_v46, %v1493_v47 }
  0x5e   : > { %v1627_v50 = vld [vmem:[%s2138_s23 + $0x100] sm:$0xf]  ;;  %v1612_v51 = vor.u32 %v1718_v49, %v1611_v48  ;;  %v1722_v52 = vld [vmem:[%s2138_s23 + $0x10c] sm:$0xf0]  ;;  %v1613_v54 = vld [vmem:[%s2138_s23 + $0xf0] sm:$0xf0] }
  0x5f   : > { %v1628_v55 = vor.u32 %v1722_v52, %v1627_v50  ;;  %v1616_v56 = vor.u32 %v1716_v53, %v1613_v54  ;;  %v1635_v57 = vld [vmem:[%s2138_s23 + $0x108] sm:$0xf]  ;;  %v1723_v58 = vld [vmem:[%s2138_s23 + $0x114] sm:$0xf0]  ;;  %v1717_v62 = vld [vmem:[%s2138_s23 + $0xec] sm:$0xf] }
  0x60   : > { %v1619_v59 = vld [vmem:[%s2138_s23 + $0xe8] sm:$0xf]  ;;  %710 = vmatpush.bf16.msra.mxu0 %v1612_v51  ;;  %v1636_v60 = vor.u32 %v1723_v58, %v1635_v57  ;;  %v1719_v61 = vld [vmem:[%s2138_s23 + $0xf4] sm:$0xf0]  ;;  %v1621_v63 = vld [vmem:[%s2138_s23 + $0xf8] sm:$0xf0] }
  0x61   : > { %731 = vmatpush.bf16.msra.mxu1 %v1628_v55  ;;  %738 = vmatpush.bf16.msra.mxu2 %v1616_v56  ;;  %v1620_v1 = vor.u32 %v1719_v61, %v1619_v59  ;;  %v1624_v2 = vor.u32 %v1717_v62, %v1621_v63  ;;  %v1595_v3 = vld [vmem:[%s2138_s23 + $0xc0] sm:$0xf]  ;;  %v1714_v4 = vld [vmem:[%s2138_s23 + $0xcc] sm:$0xf0]  ;;  %v1712_v5 = vld [vmem:[%s2138_s23 + $0xc4] sm:$0xf] }
  0x62   : > { %787 = vmatpush.bf16.msra.mxu3 %v1636_v60  ;;  %v1596_v6 = vor.u32 %v1714_v4, %v1595_v3  ;;  %v1597_v7 = vld [vmem:[%s2138_s23 + $0xd0] sm:$0xf0]  ;;  %v1603_v8 = vld [vmem:[%s2138_s23 + $0xc8] sm:$0xf]  ;;  %v1715_v9 = vld [vmem:[%s2138_s23 + $0xd4] sm:$0xf0] }
  0x63   : > { %v1600_v10 = vor.u32 %v1712_v5, %v1597_v7  ;;  %v1604_v11 = vor.u32 %v1715_v9, %v1603_v8  ;;  %v1713_v12 = vld [vmem:[%s2138_s23 + $0xcc] sm:$0xf]  ;;  %v1605_v13 = vld [vmem:[%s2138_s23 + $0xd8] sm:$0xf0]  ;;  %v1579_v14 = vld [vmem:[%s2138_s23 + $0xa0] sm:$0xf] }
  0x64   : > { %711 = vmatpush.bf16.msra.mxu0 %v1596_v6  ;;  %v1608_v15 = vor.u32 %v1713_v12, %v1605_v13  ;;  %v1710_v16 = vld [vmem:[%s2138_s23 + $0xac] sm:$0xf0]  ;;  %v1708_v17 = vld [vmem:[%s2138_s23 + $0xa4] sm:$0xf]  ;;  %v1581_v18 = vld [vmem:[%s2138_s23 + $0xb0] sm:$0xf0]  ;;  %1641 = vmatmul.msk.bf16.vlgmr.msra.gmra.mxu1 %vm706_vm0, %v2152_v0 }
  0x65   : > { %766 = vmatpush.bf16.msrb.mxu1 %v1620_v1  ;;  %739 = vmatpush.bf16.msra.mxu2 %v1600_v10  ;;  %v1580_v19 = vor.u32 %v1710_v16, %v1579_v14  ;;  %v1584_v20 = vor.u32 %v1708_v17, %v1581_v18  ;;  %v1587_v21 = vld [vmem:[%s2138_s23 + $0xa8] sm:$0xf]  ;;  %v1711_v22 = vld [vmem:[%s2138_s23 + $0xb4] sm:$0xf0]  ;;  %v1709_v23 = vld [vmem:[%s2138_s23 + $0xac] sm:$0xf] }
  0x66   : > { %794 = vmatpush.bf16.msrb.mxu3 %v1624_v2  ;;  %v1589_v24 = vld [vmem:[%s2138_s23 + $0xb8] sm:$0xf0]  ;;  %v1563_v25 = vld [vmem:[%s2138_s23 + $0x80] sm:$0xf]  ;;  %v1706_v26 = vld [vmem:[%s2138_s23 + $0x8c] sm:$0xf0]  ;;  %v1588_v27 = vor.u32 %v1711_v22, %v1587_v21 }
  0x67   : > { %1643 = vmatmul.msk.bf16.vlgmr.msra.gmra.mxu3 %vm706_vm0, %v2152_v0  ;;  %v1592_v28 = vor.u32 %v1709_v23, %v1589_v24  ;;  %v1704_v29 = vld [vmem:[%s2138_s23 + $0x84] sm:$0xf]  ;;  %v1565_v30 = vld [vmem:[%s2138_s23 + $0x90] sm:$0xf0]  ;;  %v1571_v31 = vld [vmem:[%s2138_s23 + $0x88] sm:$0xf]  ;;  %v1564_v32 = vor.u32 %v1706_v26, %v1563_v25 }
  0x68   : > { %712 = vmatpush.bf16.msra.mxu0 %v1580_v19  ;;  %v1707_v33 = vld [vmem:[%s2138_s23 + $0x94] sm:$0xf0]  ;;  %v1705_v34 = vld [vmem:[%s2138_s23 + $0x8c] sm:$0xf]  ;;  %v1573_v35 = vld [vmem:[%s2138_s23 + $0x98] sm:$0xf0]  ;;  %v1568_v36 = vor.u32 %v1704_v29, %v1565_v30 }
  0x69   : > { %767 = vmatpush.bf16.msrb.mxu1 %v1604_v11  ;;  %740 = vmatpush.bf16.msra.mxu2 %v1584_v20  ;;  %v1547_v37 = vld [vmem:[%s2138_s23 + $0x60] sm:$0xf]  ;;  %v1702_v38 = vld [vmem:[%s2138_s23 + $0x6c] sm:$0xf0]  ;;  %v1700_v39 = vld [vmem:[%s2138_s23 + $0x64] sm:$0xf]  ;;  %v1572_v41 = vor.u32 %v1707_v33, %v1571_v31  ;;  %v1576_v42 = vor.u32 %v1705_v34, %v1573_v35 }
  0x6a   : > { %795 = vmatpush.bf16.msrb.mxu3 %v1608_v15  ;;  %v1549_v40 = vld [vmem:[%s2138_s23 + $0x70] sm:$0xf0]  ;;  %v1555_v43 = vld [vmem:[%s2138_s23 + $0x68] sm:$0xf]  ;;  %v1548_v44 = vor.u32 %v1702_v38, %v1547_v37  ;;  %v1703_v45 = vld [vmem:[%s2138_s23 + $0x74] sm:$0xf0] }
  0x6b   : > { %v1701_v46 = vld [vmem:[%s2138_s23 + $0x6c] sm:$0xf]  ;;  %v1557_v47 = vld [vmem:[%s2138_s23 + $0x78] sm:$0xf0]  ;;  %v1552_v48 = vor.u32 %v1700_v39, %v1549_v40  ;;  %v1531_v49 = vld [vmem:[%s2138_s23 + $0x40] sm:$0xf]  ;;  %v1556_v53 = vor.u32 %v1703_v45, %v1555_v43 }
  0x6c   : > { %713 = vmatpush.bf16.msra.mxu0 %v1564_v32  ;;  %v1698_v50 = vld [vmem:[%s2138_s23 + $0x4c] sm:$0xf0]  ;;  %v1696_v51 = vld [vmem:[%s2138_s23 + $0x44] sm:$0xf]  ;;  %v1533_v52 = vld [vmem:[%s2138_s23 + $0x50] sm:$0xf0]  ;;  %v1560_v54 = vor.u32 %v1701_v46, %v1557_v47 }
  0x6d   : > { %768 = vmatpush.bf16.msrb.mxu1 %v1588_v27  ;;  %741 = vmatpush.bf16.msra.mxu2 %v1568_v36  ;;  %v1539_v55 = vld [vmem:[%s2138_s23 + $0x48] sm:$0xf]  ;;  %v1532_v56 = vor.u32 %v1698_v50, %v1531_v49  ;;  %v1699_v57 = vld [vmem:[%s2138_s23 + $0x54] sm:$0xf0]  ;;  %v1697_v58 = vld [vmem:[%s2138_s23 + $0x4c] sm:$0xf]  ;;  %v1536_v60 = vor.u32 %v1696_v51, %v1533_v52 }
  0x6e   : > { %796 = vmatpush.bf16.msrb.mxu3 %v1592_v28  ;;  %v1541_v59 = vld [vmem:[%s2138_s23 + $0x58] sm:$0xf0]  ;;  %v1515_v61 = vld [vmem:[%s2138_s23 + $0x20] sm:$0xf]  ;;  %v1694_v62 = vld [vmem:[%s2138_s23 + $0x2c] sm:$0xf0]  ;;  %v1540_v2 = vor.u32 %v1699_v57, %v1539_v55 }
  0x6f   : > { %v1692_v63 = vld [vmem:[%s2138_s23 + $0x24] sm:$0xf]  ;;  %v1517_v1 = vld [vmem:[%s2138_s23 + $0x30] sm:$0xf0]  ;;  %v1544_v3 = vor.u32 %v1697_v58, %v1541_v59  ;;  %v1523_v4 = vld [vmem:[%s2138_s23 + $0x28] sm:$0xf]  ;;  %v1516_v6 = vor.u32 %v1694_v62, %v1515_v61 }
  0x70   : > { %714 = vmatpush.bf16.msra.mxu0 %v1548_v44  ;;  %v1695_v5 = vld [vmem:[%s2138_s23 + $0x34] sm:$0xf0]  ;;  %v1693_v7 = vld [vmem:[%s2138_s23 + $0x2c] sm:$0xf]  ;;  %v1525_v8 = vld [vmem:[%s2138_s23 + $0x38] sm:$0xf0]  ;;  %v1520_v10 = vor.u32 %v1692_v63, %v1517_v1 }
  0x71   : > { %769 = vmatpush.bf16.msrb.mxu1 %v1572_v41  ;;  %742 = vmatpush.bf16.msra.mxu2 %v1552_v48  ;;  %v505_v9 = vld [vmem:[%s2630_s2] sm:$0xff]  ;;  %v1499_v11 = vld [vmem:[%s2138_s23] sm:$0xf]  ;;  %v1690_v12 = vld [vmem:[%s2138_s23 + $0xc] sm:$0xf0]  ;;  %v1906_v14 = vmov 0   ;;  %v1524_v18 = vor.u32 %v1695_v5, %v1523_v4  ;;  %v1528_v19 = vor.u32 %v1693_v7, %v1525_v8 }
  0x72   : > { %797 = vmatpush.bf16.msrb.mxu3 %v1576_v42  ;;  %v1688_v13 = vld [vmem:[%s2138_s23 + $0x4] sm:$0xf]  ;;  %1807 = vset.pattern.permute.xlu0 %v1906_v14  ;;  %v1501_v15 = vld [vmem:[%s2138_s23 + $0x10] sm:$0xf0]  ;;  %v1721_v16 = vld [vmem:[%s2138_s23 + $0x10c] sm:$0xf]  ;;  %v1500_v23 = vor.u32 %v1690_v12, %v1499_v11 }
  0x73   : > { %509 = vperm.xlu0 %1807, %v505_v9   ;;  %v1637_v17 = vld [vmem:[%s2138_s23 + $0x118] sm:$0xf0]  ;;  %1808 = vset.pattern.permute.xlu1 %v1906_v14  ;;  %v1507_v20 = vld [vmem:[%s2138_s23 + $0x8] sm:$0xf]  ;;  %v1720_v21 = vld [vmem:[%s2138_s23 + $0x104] sm:$0xf]  ;;  %v1504_v27 = vor.u32 %v1688_v13, %v1501_v15 }
  0x74   : > { %715 = vmatpush.bf16.msra.mxu0 %v1532_v56  ;;  %v1629_v22 = vld [vmem:[%s2138_s23 + $0x110] sm:$0xf0]  ;;  %v1691_v24 = vld [vmem:[%s2138_s23 + $0x14] sm:$0xf0]  ;;  %v1689_v25 = vld [vmem:[%s2138_s23 + $0xc] sm:$0xf]  ;;  %1809 = vset.pattern.permute.xlu2 %v1906_v14  ;;  %v1640_v30 = vor.u32 %v1721_v16, %v1637_v17 }
  0x75   : > { %770 = vmatpush.bf16.msrb.mxu1 %v1556_v53  ;;  %743 = vmatpush.bf16.msra.mxu2 %v1536_v60  ;;  %v1509_v26 = vld [vmem:[%s2138_s23 + $0x18] sm:$0xf0]  ;;  %v1491_v28 = vld [vmem:[%s2629_s1] sm:$0xf]  ;;  %v1725_v29 = vld [vmem:[%s2629_s1 + $0x4] sm:$0xf0]  ;;  %v1632_v31 = vor.u32 %v1720_v21, %v1629_v22  ;;  %v1508_v32 = vor.u32 %v1691_v24, %v1507_v20 }
  0x76   : > { %798 = vmatpush.bf16.msrb.mxu3 %v1560_v54  ;;  %v1512_v33 = vor.u32 %v1689_v25, %v1509_v26  ;;  %v506_v34 = vld [vmem:[%s2630_s2 + $0x8] sm:$0xff]  ;;  %v1492_v35 = vor.u32 %v1725_v29, %v1491_v28  ;;  %v837_v46 = vld [vmem:[%s2632_s4] sm:$0xff]  ;;  %v839_v9 = vld [vmem:[%s2632_s4 + $0x10] sm:$0x1f]  ;;  %s1731_s23 = smul.u32 80, %s410_s12  ;;  %vm1010_vm2 = vcmask 1040384  }
  0x77   : > { %842 = vperm.xlu1 %1808, %v837_v46   ;;  %v838_v55 = vld [vmem:[%s2632_s4 + $0x8] sm:$0xff]  ;;  %v1726_v1 = vld [vmem:[%s2631_s3] sm:$0xff]  ;;  %852 = vperm.xlu2 %1809, %v839_v9   ;;  %vm1011_vm3 = vcmask 1044484   ;;  %s2438_s28 = scalar_select %p457_p1, %s1892_s29, 1  ;;  %vm1099_vm9 = vcmask 1041408   ;;  %vm1100_vm11 = vcmask 1045508  }
  0x78   : > { %716 = vmatpush.bf16.msra.mxu0 %v1516_v6  ;;  %v832_v11 = vld [vmem:[%s2631_s3 + $0x8] sm:$0x7]  ;;  %s2258_s10 = scalar_lea.vmem [#allocation3], %s1731_s23  ;;  %vm2365_vm4 = vmor %vm1010_vm2, %vm1011_vm3  ;;  %s1733_s12 = smul.u32 (%p2028_p10), 40, %s1892_s29 }
  0x79   : > { %771 = vmatpush.bf16.msrb.mxu1 %v1540_v2  ;;  %744 = vmatpush.bf16.msra.mxu2 %v1520_v10  ;;  %v860_v15 = vunpack.c.l.b16 %v832_v11  ;;  %v2261_v25 = vld [vmem:[%s2258_s10 + $0x20] sm:$0x77]  ;;  %v2264_v26 = vld [vmem:[%s2258_s10 + $0x28] sm:$0x77]  ;;  %s460_s14 = scalar_select %p459_p2, %s2410_s20, 7  ;;  %vm2496_vm15 = vmor %vm1099_vm9, %vm1100_vm11 }
  0x7a   : > { %799 = vmatpush.bf16.msrb.mxu3 %v1544_v3  ;;  %957 = vst [vmem:[#allocation1] ss:$2 sm:$0xff] %v2261_v25  ;;  %s1487_s16 = sshll.u32 %s2438_s28, 3  ;;  %s1306_s23 = sadd.s32 (%p2028_p10), %s1733_s12, %s2410_s20 }
  0x7b   : > { %514 = vperm.xlu0 %1807, %v506_v34   ;;  %v862_v21 = vpack.c.b16 %v860_v15, %v860_v15  ;;  %959 = vst [vmem:[#allocation1 + $0x10] ss:$2 sm:$0xff] %v2264_v26  ;;  %s2511_s18 = sadd.s32 %s1487_s16, %s460_s14 }
  0x7c   : > { %717 = vmatpush.bf16.msra.mxu0 %v1500_v23  ;;  %s1488_s19 = sshll.u32 %s2511_s18, 2 }
  0x7d   : > { %772 = vmatpush.bf16.msrb.mxu1 %v1524_v18  ;;  %745 = vmatpush.bf16.msra.mxu2 %v1504_v27  ;;  %v941_v27 = vld [vmem:[%s2258_s10] sm:$0x77]  ;;  %s464_s11 = scalar_lea.vmem %s2635_s7, %s1488_s19 }
  0x7e   : > { %800 = vmatpush.bf16.msrb.mxu3 %v1528_v19 }
  0x7f   : > { %718 = vmatmul.bf16.vlgmr.msra.gmra.mxu0 %v1492_v35  ;;  %847 = vperm.xlu1 %1808, %v838_v55  }
  0x80   : > { %815 = vmatpush.bf16.msrb.mxu0 %v1640_v30  ;;  %746 = vmatmul.bf16.vlgmr.msra.gmra.mxu2 %v1492_v35  ;;  %v942_v30 = vld [vmem:[%s2258_s10 + $0x8] sm:$0x77] }
  0x81   : > { %759 = vmatpush.bf16.msrb.mxu2 %v1632_v31  ;;  %773 = vmatpush.bf16.msrb.mxu1 %v1508_v32  ;;  %v2269_v28 = vld.sshfl [vmem:[#allocation1] sm:$0xff pattern:$0x75316420]  ;;  %v2271_v29 = vld.sshfl [vmem:[#allocation1 + $0x8] sm:$0xff pattern:$0x75316420] }
  0x82   : > { %801 = vmatpush.bf16.msrb.mxu3 %v1512_v33  ;;  %978 = vst [vmem:[#allocation1] ss:$2 sm:$0xff] %v941_v27  ;;  %v2274_v31 = vld.sshfl [vmem:[#allocation1 + $0x10] sm:$0xff pattern:$0x75316420] }
  0x83   : > { %v2276_v32 = vld.sshfl [vmem:[#allocation1 + $0x18] sm:$0xff pattern:$0x75316420] }
  0x84   : > { %774 = vmatmul.bf16.vlgmr.msrb.gmra.mxu1 %v1492_v35  ;;  %980 = vst [vmem:[#allocation1 + $0x10] ss:$2 sm:$0xff] %v942_v30  ;;  %v2279_v33 = vld [vmem:[%s2258_s10 + $0x30] sm:$0x77] }
  0x85   : > { %802 = vmatmul.bf16.vlgmr.msrb.gmra.mxu3 %v1492_v35 }
  0x89   : > { %v2281_v34 = vld.sshfl [vmem:[#allocation1] sm:$0xff pattern:$0x75316420]  ;;  %v2283_v35 = vld.sshfl [vmem:[#allocation1 + $0x8] sm:$0xff pattern:$0x75316420] }
  0x8a   : > { %1027 = vst [vmem:[#allocation1] ss:$2 sm:$0xff] %v2279_v33 }
  0x8f   : > { %1644 = vmatmul.msk.bf16.vlgmr.msrb.gmra.mxu0 %vm706_vm0, %v2152_v0 }
  0x90   : > { %1642 = vmatmul.msk.bf16.vlgmr.msrb.gmra.mxu2 %vm706_vm0, %v2152_v0 }
  0xe1   : > { %v733_v36 = vpop.f32.mrf.mxu1 }
  0xe5   : > { %v510_v39 = vpop.permute.xlu0 %509 }
  0xe9   : > { %v735_v38 = vpop.f32.mrf.mxu1 }
  0xea   : > { %v789_v37 = vpop.f32.mrf.mxu3 }
  0xed   : > { %v515_v45 = vpop.permute.xlu0 %514 }
  0xf2   : > { %v791_v40 = vpop.f32.mrf.mxu3 }
  0xfc   : > { %v719_v41 = vpop.f32.mrf.mxu0 }
  0xfd   : > { %v720_v43 = vadd.f32 %v719_v41, %v510_v39  ;;  %v1030_v41 = vld.sshfl [vmem:[#allocation1] sm:$0xff pattern:$0x75316420] }
  0xff   : > { %v734_v49 = vadd.f32 %v733_v36, %v720_v43  ;;  %v2287_v36 = vld [vmem:[%s2258_s10 + $0x38] sm:$0x77] }
 0x101   : > { %v775_v42 = vpop.f32.mrf.mxu1  ;;  %v822_v56 = vmax.f32 %v734_v49, 0.0 }
 0x102   : > { %v776_v47 = vadd.f32 %v775_v42, %v510_v39  ;;  %v2296_v42 = vld.sshfl [vmem:[#allocation1 + $0x8] sm:$0xff pattern:$0x75316420] }
 0x103   : > { %v747_v44 = vpop.f32.mrf.mxu2  ;;  %v1035_v11 = vrot.slane %v2296_v42, 2 }
 0x104   : > { %v721_v48 = vpop.f32.mrf.mxu0  ;;  %v790_v52 = vadd.f32 %v789_v37, %v776_v47  ;;  %v748_v12 = vadd.f32 %v747_v44, %v510_v39  ;;  %v2289_v37 = vld.sshfl [vmem:[#allocation1 + $0x10] sm:$0xff pattern:$0x75316420] }
 0x105   : > { %v722_v50 = vadd.f32 %v721_v48, %v515_v45 }
 0x106   : > { %v824_v60 = vmax.f32 %v790_v52, 0.0 }
 0x107   : > { %v736_v53 = vadd.f32 %v735_v38, %v722_v50  ;;  %v2291_v38 = vld.sshfl [vmem:[#allocation1 + $0x18] sm:$0xff pattern:$0x75316420] }
 0x108   : > { %v803_v0 = vpop.f32.mrf.mxu3  ;;  %1029 = vst [vmem:[#allocation1 + $0x10] ss:$2 sm:$0xff] %v2287_v36  ;;  %v988_v30 = vrot.slane %v2291_v38, 5 }
 0x109   : > { %v777_v51 = vpop.f32.mrf.mxu1  ;;  %v826_v57 = vmax.f32 %v736_v53, 0.0  ;;  %v804_v3 = vadd.f32 %v803_v0, %v510_v39  ;;  %v1657_v39 = vld [vmem:[%s2258_s10 + $0x10] sm:$0x77] }
 0x10a   : > { %v778_v54 = vadd.f32 %v777_v51, %v515_v45  ;;  %1052 = vst [vmem:[#allocation1] ss:$2 sm:$0xff] %v1657_v39  ;;  %v1034_v51 = vrot.slane %v1030_v41, 2 }
 0x10b   : > { %v749_v59 = vpop.f32.mrf.mxu2  ;;  %v833_v61 = vpack.c.bf16 %v826_v57, %v822_v56 }
 0x10c   : > { %v792_v58 = vadd.f32 %v791_v40, %v778_v54  ;;  %v817_v63 = vpop.f32.mrf.mxu0  ;;  %v750_v16 = vadd.f32 %v749_v59, %v515_v45  ;;  %v1658_v40 = vld [vmem:[%s2258_s10 + $0x18] sm:$0x77] }
 0x10d   : > { %876 = vmatpush.bf16.msra.mxu2 %v833_v61  ;;  %v818_v7 = vadd.f32 %v817_v63, %v804_v3 }
 0x10e   : > { %v828_v62 = vmax.f32 %v792_v58, 0.0 }
 0x10f   : > { %v825_v13 = vmax.f32 %v818_v7, 0.0  ;;  %v1032_v43 = vld.sshfl [vmem:[#allocation1 + $0x10] sm:$0xff pattern:$0x75316420]  ;;  %v985_v7 = vrot.slane %v2281_v34, 5 }
 0x110   : > { %v835_v2 = vpack.c.bf16 %v828_v62, %v824_v60  ;;  %v805_v4 = vpop.f32.mrf.mxu3  ;;  %1649 = vmatmul.msk.bf16.vlgmr.msra.gmra.mxu2 %vm706_vm0, %v1726_v1  ;;  %v2298_v44 = vld.sshfl [vmem:[#allocation1 + $0x18] sm:$0xff pattern:$0x75316420]  ;;  %v1036_v47 = vrot.slane %v1032_v43, 2 }
 0x111   : > { %v806_v6 = vadd.f32 %v805_v4, %v515_v45  ;;  %1054 = vst [vmem:[#allocation1 + $0x10] ss:$2 sm:$0xff] %v1658_v40  ;;  %v843_v45 = vpop.permute.xlu1 %842  ;;  %v1055_v0 = vld.sshfl [vmem:[#allocation1] sm:$0xff pattern:$0x75316420] }
 0x112   : > { %912 = vmatpush.bf16.msra.mxu0 %v835_v2  ;;  %v1059_v56 = vrot.slane %v1055_v0, 2 }
 0x113   : > { %v761_v5 = vpop.f32.mrf.mxu2 }
 0x114   : > { %v819_v8 = vpop.f32.mrf.mxu0  ;;  %v762_v17 = vadd.f32 %v761_v5, %v748_v12  ;;  %v2317_v12 = vld.sshfl [vmem:[#allocation1 + $0x8] sm:$0xff pattern:$0x75316420] }
 0x115   : > { %1653 = vmatmul.msk.bf16.vlgmr.msra.gmra.mxu0 %vm706_vm0, %v1726_v1  ;;  %v820_v10 = vadd.f32 %v819_v8, %v806_v6  ;;  %v964_v6 = vrot.slane %v2269_v28, 5  ;;  %v1060_v28 = vrot.slane %v2317_v12, 2 }
 0x116   : > { %v823_v22 = vmax.f32 %v762_v17, 0.0  ;;  %v967_v17 = vrot.slane %v2276_v32, 5 }
 0x117   : > { %v829_v14 = vmax.f32 %v820_v10, 0.0  ;;  %v965_v10 = vrot.slane %v2271_v29, 5 }
 0x118   : > { %v1057_v46 = vld.sshfl [vmem:[#allocation1 + $0x10] sm:$0xff pattern:$0x75316420] }
 0x119   : > { %v836_v18 = vpack.c.bf16 %v829_v14, %v825_v13  ;;  %v1061_v50 = vrot.slane %v1057_v46, 2  ;;  %v2304_v59 = vpop.permute.xlu1 %847  ;;  %v2321_v14 = vld.sshfl [vmem:[#allocation1 + $0x18] sm:$0xff pattern:$0x75316420] }
 0x11b   : > { %v763_v19 = vpop.f32.mrf.mxu2  ;;  %930 = vmatpush.bf16.msra.mxu3 %v836_v18  ;;  %v1037_v18 = vrot.slane %v2298_v44, 2 }
 0x11c   : > { %v764_v20 = vadd.f32 %v763_v19, %v750_v16  ;;  %v966_v16 = vrot.slane %v2274_v31, 5  ;;  %v1062_v31 = vrot.slane %v2321_v14, 2 }
 0x11e   : > { %v827_v23 = vmax.f32 %v764_v20, 0.0  ;;  %1655 = vmatmul.msk.bf16.vlgmr.msra.gmra.mxu3 %vm706_vm0, %v1726_v1 }
 0x120   : > { %v834_v24 = vpack.c.bf16 %v827_v23, %v823_v22  ;;  %1650 = vmatmul.msk.bf16.gmra.mxu2 %vm706_vm0, %v862_v21  ;;  %v987_v22 = vrot.slane %v2289_v37, 5 }
 0x122   : > { %894 = vmatpush.bf16.msra.mxu1 %v834_v24 }
 0x125   : > { %1654 = vmatmul.msk.bf16.gmra.mxu0 %vm706_vm0, %v862_v21  ;;  %1651 = vmatmul.msk.bf16.vlgmr.msra.gmra.mxu1 %vm706_vm0, %v1726_v1 }
 0x12e   : > { %1656 = vmatmul.msk.bf16.gmra.mxu3 %vm706_vm0, %v862_v21 }
 0x135   : > { %1652 = vmatmul.msk.bf16.gmra.mxu1 %vm706_vm0, %v862_v21  ;;  %v986_v21 = vrot.slane %v2283_v35, 5 }
 0x192   : > { %v914_v48 = vpop.f32.mrf.mxu0 }
 0x193   : > { %v2300_v49 = vadd.f32 %v914_v48, %v843_v45  ;;  %v878_v54 = vpop.f32.mrf.mxu2 }
 0x194   : > { %v879_v55 = vadd.f32 %v878_v54, %v843_v45 }
 0x195   : > { %v1044_v52 = vmul.f32 %v1036_v47, %v2300_v49  ;;  %v1202_v53 = vsub.f32 0.0, %v2300_v49 }
 0x196   : > { %v1042_v60 = vmul.f32 %v1034_v51, %v879_v55  ;;  %v1200_v61 = vsub.f32 0.0, %v879_v55  ;;  %v972_v39 = vmul.f32 %v964_v6, %v879_v55 }
 0x197   : > { %v1069_v57 = vadd.f32 %v1061_v50, %v1044_v52  ;;  %v1208_v58 = vmul.f32 1.442695, %v1202_v53 }
 0x198   : > { %v1067_v63 = vadd.f32 %v1059_v56, %v1042_v60  ;;  %v1204_v1 = vmul.f32 1.442695, %v1200_v61 }
 0x199   : > { %1085 = vst.sshfl [vmem:[#allocation1 + $0x10] sm:$0xff pattern:$0x75316420] %v1069_v57  ;;  %1810 = vpow2.f32 %v1208_v58  ;;  %v993_v57 = vadd.f32 %v985_v7, %v972_v39 }
 0x19a   : > { %v916_v62 = vpop.f32.mrf.mxu0  ;;  %1083 = vst.sshfl [vmem:[#allocation1] sm:$0xff pattern:$0x75316420] %v1067_v63  ;;  %1812 = vpow2.f32 %v1204_v1 }
 0x19b   : > { %v2307_v2 = vadd.f32 %v916_v62, %v2304_v59  ;;  %v880_v4 = vpop.f32.mrf.mxu2 }
 0x19c   : > { %v2313_v8 = vadd.f32 %v880_v4, %v2304_v59 }
 0x19d   : > { %v1048_v3 = vmul.f32 %v1036_v47, %v2307_v2  ;;  %v1117_v35 = vmin.f32 %v2307_v2, 4.1351666 }
 0x19e   : > { %v1046_v15 = vmul.f32 %v1034_v51, %v2313_v8  ;;  %v1115_v19 = vmin.f32 %v2313_v8, 4.1351666 }
 0x19f   : > { %v1811_v5 = vpop.eup %1810  ;;  %v1073_v9 = vadd.f32 %v1061_v50, %v1048_v3  ;;  %v1123_v54 = vmul.f32 1.442695, %v1117_v35 }
 0x1a0   : > { %v2319_v13 = vadd.f32 1.0, %v1811_v5  ;;  %v1813_v20 = vpop.eup %1812  ;;  %v1071_v23 = vadd.f32 %v1059_v56, %v1046_v15  ;;  %v1119_v40 = vmul.f32 1.442695, %v1115_v19 }
 0x1a1   : > { %1089 = vst.sshfl [vmem:[#allocation1 + $0x30] sm:$0xff pattern:$0x75316420] %v1073_v9  ;;  %v2331_v24 = vadd.f32 1.0, %v1813_v20  ;;  %v932_v29 = vpop.f32.mrf.mxu3 }
 0x1a2   : > { %1814 = vrcp.f32 %v2319_v13  ;;  %v896_v27 = vpop.f32.mrf.mxu1  ;;  %v933_v34 = vadd.f32 %v932_v29, %v843_v45  ;;  %1087 = vst.sshfl [vmem:[#allocation1 + $0x20] sm:$0xff pattern:$0x75316420] %v1071_v23  ;;  %v2337_v37 = vpop.f32.mrf.mxu0  ;;  %vm1251_vm5 = vweird.f32 %v2319_v13  ;;  %v1255_v44 = vand.u32 2147483647, %v2319_v13 }
 0x1a3   : > { %v897_v32 = vadd.f32 %v896_v27, %v843_v45  ;;  %1816 = vrcp.f32 %v2331_v24  ;;  %v2340_v41 = vpop.f32.mrf.mxu2  ;;  %v974_v45 = vmul.f32 %v966_v16, %v2300_v49  ;;  %vm1221_vm7 = vweird.f32 %v2331_v24 }
 0x1a4   : > { %v975_v47 = vmul.f32 %v967_v17, %v933_v34  ;;  %v1045_v48 = vmul.f32 %v1037_v18, %v933_v34  ;;  %v1203_v50 = vsub.f32 0.0, %v933_v34  ;;  %1818 = vpow2.f32 %v1119_v40 }
 0x1a5   : > { %v973_v43 = vmul.f32 %v965_v10, %v897_v32  ;;  %v1043_v38 = vmul.f32 %v1035_v11, %v897_v32  ;;  %v1201_v46 = vsub.f32 0.0, %v897_v32  ;;  %v995_v61 = vadd.f32 %v987_v22, %v974_v45 }
 0x1a6   : > { %v996_v55 = vadd.f32 %v988_v30, %v975_v47  ;;  %v1070_v56 = vadd.f32 %v1062_v31, %v1045_v48  ;;  %v1210_v49 = vmul.f32 1.442695, %v1203_v50  ;;  %vm2487_vm14 = vcmp.eq.f32.partialorder %v1255_v44, 8.507059e+37 }
 0x1a7   : > { %v994_v51 = vadd.f32 %v986_v21, %v973_v43  ;;  %v1068_v52 = vadd.f32 %v1060_v28, %v1043_v38  ;;  %v1206_v53 = vmul.f32 1.442695, %v1201_v46 }
 0x1a8   : > { %v2347_v0 = vpop.eup %1814  ;;  %v1002_v63 = vrot.slane %v996_v55, 4  ;;  %1086 = vst.sshfl [vmem:[#allocation1 + $0x18] sm:$0xff pattern:$0x75316420] %v1070_v56 }
 0x1a9   : > { %v1001_v58 = vrot.slane %v994_v51, 4  ;;  %1820 = vpow2.f32 %v1206_v53  ;;  %1084 = vst.sshfl [vmem:[#allocation1 + $0x8] sm:$0xff pattern:$0x75316420] %v1068_v52  ;;  %v2357_v60 = vpop.eup %1816  ;;  %v1247_v62 = vmul.f32 %v2347_v0, %v2319_v13  ;;  %v934_v3 = vpop.f32.mrf.mxu3  ;;  %vm1252_vm6 = vweird.f32 %v2347_v0 }
 0x1aa   : > { %1822 = vpow2.f32 %v1210_v49  ;;  %v898_v1 = vpop.f32.mrf.mxu1  ;;  %v921_v7 = vpop.f32.mrf.mxu0  ;;  %v1217_v9 = vmul.f32 %v2357_v60, %v2331_v24  ;;  %v1005_v16 = vsel %vm1003_vm1, %v995_v61, %v1002_v63  ;;  %v1008_v19 = vsel %vm1003_vm1, %v1002_v63, %v995_v61  ;;  %vm2445_vm10 = vmor %vm1251_vm5, %vm1252_vm6 }
 0x1ab   : > { %v1004_v4 = vsel %vm1003_vm1, %v993_v57, %v1001_v58  ;;  %v1006_v5 = vsel %vm1003_vm1, %v1001_v58, %v993_v57  ;;  %1824 = vpow2.f32 %v1123_v54  ;;  %v885_v17 = vpop.f32.mrf.mxu2  ;;  %v1667_v20 = vrot.slane %v1005_v16, 11  ;;  %v2376_v22 = vpop.eup %1818 }
 0x1ac   : > { %v1665_v10 = vrot.slane %v1004_v4, 11  ;;  %v1666_v15 = vrot.slane %v1006_v5, 11  ;;  %v2374_v21 = vadd.f32 %v898_v1, %v2304_v59  ;;  %v1248_v27 = vsub.f32 1.0, %v1247_v62  ;;  %v2426_v52 = vpop.permute.xlu2 %852 }
 0x1ad   : > { %v1668_v29 = vrot.slane %v1008_v19, 11  ;;  %v2381_v30 = vadd.f32 %v934_v3, %v2304_v59  ;;  %v1218_v39 = vsub.f32 1.0, %v1217_v9  ;;  %v1227_v53 = vand.u32 2147483648, %v2331_v24 }
 0x1ae   : > { %v1016_v23 = vsel %vm2365_vm4, %v1665_v10, %v1666_v15  ;;  %v1047_v34 = vmul.f32 %v1035_v11, %v2374_v21  ;;  %v1116_v38 = vmin.f32 %v2374_v21, 4.1351666  ;;  %v1249_v48 = vmul.f32 %v2347_v0, %v1248_v27 }
 0x1af   : > { %v1821_v32 = vpop.eup %1820  ;;  %1023 = vst [vmem:[%s2384_s26] sm:$0x77] %v1016_v23  ;;  %v1020_v59 = vsel %vm2365_vm4, %v1667_v20, %v1668_v29  ;;  %v1049_v11 = vmul.f32 %v1037_v18, %v2381_v30  ;;  %v2407_v45 = vld [vmem:[#allocation1 + $0x11] ss:$2 sm:$0xff]  ;;  %v1219_v12 = vmul.f32 %v2357_v60, %v1218_v39  ;;  %v1225_v18 = vand.u32 2147483647, %v2331_v24 }
 0x1b0   : > { %v1823_v35 = vpop.eup %1822  ;;  %v2390_v40 = vadd.f32 1.0, %v1821_v32  ;;  %v2394_v43 = vld [vmem:[#allocation1 + $0x1] ss:$2 sm:$0xff]  ;;  %1024 = vst [vmem:[%s2384_s26 + $0x8] sm:$0x77] %v1020_v59  ;;  %v1072_v42 = vadd.f32 %v1060_v28, %v1047_v34  ;;  %v1257_v28 = vand.u32 2147483648, %v2319_v13  ;;  %vm1222_vm8 = vweird.f32 %v2357_v60 }
 0x1b1   : > { %v2397_v46 = vpop.eup %1824  ;;  %v2400_v47 = vadd.f32 1.0, %v1823_v35  ;;  %1146 = vst.sshfl [vmem:[#allocation1] sm:$0xff pattern:$0x75316420] %v2376_v22  ;;  %v2416_v51 = vpop.f32.mrf.mxu3  ;;  %v1121_v54 = vmul.f32 1.442695, %v1116_v38  ;;  %v1074_v55 = vadd.f32 %v1062_v31, %v1049_v11  ;;  %v2441_v49 = vadd.f32 %v2347_v0, %v1249_v48  ;;  %vm2466_vm12 = vmor %vm1221_vm7, %vm1222_vm8 }
 0x1b2   : > { %1826 = vrcp.f32 %v2390_v40  ;;  %v901_v50 = vpop.f32.mrf.mxu1  ;;  %1088 = vst.sshfl [vmem:[#allocation1 + $0x28] sm:$0xff pattern:$0x75316420] %v1072_v42  ;;  %v1118_v56 = vmin.f32 %v2381_v30, 4.1351666  ;;  %v884_v57 = vadd.f32 %v2340_v41, %v2426_v52  ;;  %v2454_v61 = vadd.f32 %v2357_v60, %v1219_v12 }
 0x1b3   : > { %1828 = vrcp.f32 %v2400_v47  ;;  %1148 = vst.sshfl [vmem:[#allocation1 + $0x10] sm:$0xff pattern:$0x75316420] %v2397_v46  ;;  %v1240_v13 = vand.u32 2147483647, %v2390_v40  ;;  %v2457_v62 = vor.u32 1.1754944e-38, %v1257_v28  ;;  %v902_v63 = vadd.f32 %v901_v50, %v2426_v52 }
 0x1b4   : > { %1830 = vpow2.f32 %v1121_v54  ;;  %1090 = vst.sshfl [vmem:[#allocation1 + $0x38] sm:$0xff pattern:$0x75316420] %v1074_v55  ;;  %v1125_v31 = vmul.f32 1.442695, %v1118_v56  ;;  %vm2470_vm13 = vcmp.eq.f32.partialorder %v1225_v18, 8.507059e+37  ;;  %v1254_v24 = vsel %vm2445_vm10, %v2347_v0, %v2441_v49 }
 0x1b5   : > { %v2474_v4 = vor.u32 1.1754944e-38, %v1227_v53  ;;  %v1242_v7 = vand.u32 2147483648, %v2390_v40  ;;  %v1270_v15 = vand.u32 2147483647, %v2400_v47  ;;  %vm1236_vm0 = vweird.f32 %v2390_v40 }
 0x1b6   : > { %1832 = vpow2.f32 %v1125_v31  ;;  %v1669_v27 = vrot.slane %v2394_v43, 10  ;;  %v1224_v32 = vsel %vm2466_vm12, %v2357_v60, %v2454_v61  ;;  %vm2506_vm2 = vcmp.eq.f32.partialorder %v1240_v13, 8.507059e+37 }
 0x1b7   : > { %v1272_v39 = vand.u32 2147483648, %v2400_v47  ;;  %v920_v38 = vadd.f32 %v2337_v37, %v2426_v52  ;;  %vm1266_vm5 = vweird.f32 %v2400_v47  ;;  %v1243_v12 = vor.u32 1.1754944e-38, %v1242_v7  ;;  %v1663_v7 = vld [vmem:[%s2258_s10 + $0x40] sm:$0x77]  ;;  %v1323_v6 = vld [vmem:[%s2384_s26 + $0x8] sm:$0xff] (%p2028_p10) }
 0x1b8   : > { %v2451_v58 = vpop.eup %1826  ;;  %v1670_v18 = vrot.slane %v2407_v45, 10  ;;  %v938_v55 = vadd.f32 %v2416_v51, %v2426_v52  ;;  %vm1271_vm9 = vcmp.eq.f32.partialorder %v1270_v15, 8.507059e+37  ;;  %v1229_v13 = vsel %vm2470_vm13, %v2474_v4, %v1224_v32 }
 0x1b9   : > { %v2460_v1 = vpop.eup %1828  ;;  %v1232_v5 = vmul.f32 %v2451_v58, %v2390_v40  ;;  %v1096_v16 = vld [vmem:[#allocation1 + $0x20] ss:$2 sm:$0xff]  ;;  %v939_v20 = vpop.f32.mrf.mxu3  ;;  %vm1237_vm3 = vweird.f32 %v2451_v58  ;;  %v1273_v40 = vor.u32 1.1754944e-38, %v1272_v39 }
 0x1ba   : > { %v1262_v10 = vmul.f32 %v2460_v1, %v2400_v47  ;;  %v903_v19 = vpop.f32.mrf.mxu1  ;;  %v1104_v29 = vrot.slane %v1096_v16, 6  ;;  %1173 = vst.sshfl [vmem:[#allocation1 + $0x20] sm:$0xff pattern:$0x75316420] %v884_v57  ;;  %v1831_v59 = vpop.eup %1830  ;;  %vm1267_vm6 = vweird.f32 %v2460_v1  ;;  %vm1238_vm7 = vmor %vm1236_vm0, %vm1237_vm3 }
 0x1bb   : > { %v1233_v23 = vsub.f32 1.0, %v1232_v5  ;;  %1174 = vst.sshfl [vmem:[#allocation1 + $0x28] sm:$0xff pattern:$0x75316420] %v902_v63  ;;  %v1131_v11 = vrot.slane %v1831_v59, 4  ;;  %vm1268_vm8 = vmor %vm1266_vm5, %vm1267_vm6 }
 0x1bc   : > { %v1263_v35 = vsub.f32 1.0, %v1262_v10  ;;  %v1105_v60 = vsel %vm2496_vm15, %v1669_v27, %v1104_v29  ;;  %1147 = vst.sshfl [vmem:[#allocation1 + $0x8] sm:$0xff pattern:$0x75316420] %v1831_v59  ;;  %v1098_v48 = vld [vmem:[#allocation1 + $0x30] ss:$2 sm:$0xff]  ;;  %v1833_v50 = vpop.eup %1832 }
 0x1bd   : > { %v1234_v43 = vmul.f32 %v2451_v58, %v1233_v23  ;;  %1671 = vst [vmem:[%s2384_s26 + $0x10] sm:$0x77] %v1105_v60  ;;  %v1108_v28 = vrot.slane %v1098_v48, 6  ;;  %v1133_v53 = vsel %vm1003_vm1, %v2376_v22, %v1131_v11  ;;  %v1132_v54 = vrot.slane %v1833_v50, 4  ;;  %v1664_v10 = vld [vmem:[%s2258_s10 + $0x48] sm:$0x77] }
 0x1be   : > { %v1264_v42 = vmul.f32 %v2460_v1, %v1263_v35  ;;  %1149 = vst.sshfl [vmem:[#allocation1 + $0x18] sm:$0xff pattern:$0x75316420] %v1833_v50  ;;  %v1673_v56 = vrot.slane %v1133_v53, 9  ;;  %s1684_s10 = sshll.u32 (%p2028_p10), %s1306_s23, 2 }
 0x1bf   : > { %v1235_v44 = vadd.f32 %v2451_v58, %v1234_v43  ;;  %v1109_v31 = vsel %vm2496_vm15, %v1670_v18, %v1108_v28  ;;  %1175 = vst.sshfl [vmem:[#allocation1 + $0x30] sm:$0xff pattern:$0x75316420] %v920_v38  ;;  %v1134_v51 = vsel %vm1003_vm1, %v2397_v46, %v1132_v54  ;;  %s1308_s21 = scalar_lea.vmem (%p2028_p10), %s2634_s6, %s1684_s10 }
 0x1c0   : > { %v1265_v37 = vadd.f32 %v2460_v1, %v1264_v42  ;;  %1672 = vst [vmem:[%s2384_s26 + $0x18] sm:$0x77] %v1109_v31  ;;  %v1674_v61 = vrot.slane %v1134_v51, 9 }
 0x1c1   : > { %v1239_v45 = vsel %vm1238_vm7, %v2451_v58, %v1235_v44  ;;  %v1141_v58 = vmul.f32 %v1673_v56, %v2261_v25  ;;  %1176 = vst.sshfl [vmem:[#allocation1 + $0x38] sm:$0xff pattern:$0x75316420] %v938_v55  ;;  %v1259_v25 = vsel %vm2487_vm14, %v2457_v62, %v1254_v24 }
 0x1c2   : > { %v1244_v22 = vsel %vm2506_vm2, %v1243_v12, %v1239_v45  ;;  %v1269_v57 = vsel %vm1268_vm8, %v2460_v1, %v1265_v37  ;;  %v1142_v4 = vmul.f32 %v1674_v61, %v2264_v26  ;;  %v1182_v0 = vld [vmem:[#allocation1 + $0x20] ss:$2 sm:$0xff]  ;;  %1324 = vst [vmem:[%s1308_s21 + $0x8] sm:$0xff] (%p2028_p10), %v1323_v6 }
 0x1c3   : > { %v1280_v47 = vrot.slane %v1244_v22, 4  ;;  %v1274_v52 = vsel %vm1271_vm9, %v1273_v40, %v1269_v57  ;;  %1675 = vst [vmem:[%s2384_s26 + $0x20] sm:$0x77] %v1141_v58  ;;  %v1151_v1 = vld [vmem:[#allocation1 + $0x1] ss:$2 sm:$0xff] }
 0x1c4   : > { %v1281_v63 = vrot.slane %v1274_v52, 4  ;;  %v1156_v3 = vmul.f32 %v2279_v33, %v1151_v1  ;;  %1169 = vst.sshfl [vmem:[#allocation1] sm:$0xff pattern:$0x75316420] %v2313_v8  ;;  %v1187_v33 = vrot.slane %v1182_v0, 7  ;;  %v1325_v16 = vld [vmem:[%s2384_s26 + $0x10] sm:$0xff] (%p2028_p10) }
 0x1c5   : > { %v1282_v46 = vsel %vm1003_vm1, %v1229_v13, %v1280_v47  ;;  %v1153_v5 = vld [vmem:[#allocation1 + $0x11] ss:$2 sm:$0xff]  ;;  %1170 = vst.sshfl [vmem:[#allocation1 + $0x8] sm:$0xff pattern:$0x75316420] %v2374_v21 }
 0x1c6   : > { %1286 = vst [vmem:[%s464_s11] sm:$0x77] %v1282_v46  ;;  %v1283_v41 = vsel %vm1003_vm1, %v1259_v25, %v1281_v63  ;;  %v1157_v14 = vmul.f32 %v2287_v36, %v1153_v5 }
 0x1c7   : > { %1287 = vst [vmem:[%s464_s11 + $0x8] sm:$0x77] %v1283_v41  ;;  %v1327_v17 = vld [vmem:[%s2384_s26 + $0x18] sm:$0xff] (%p2028_p10) }
 0x1c8   : > { %1677 = vst [vmem:[%s2384_s26 + $0x30] sm:$0x77] %v1156_v3  ;;  %v1184_v49 = vld [vmem:[#allocation1 + $0x30] ss:$2 sm:$0xff] }
 0x1c9   : > { %1676 = vst [vmem:[%s2384_s26 + $0x28] sm:$0x77] %v1142_v4  ;;  %v1191_v8 = vrot.slane %v1184_v49, 7 }
 0x1ca   : > { %1678 = vst [vmem:[%s2384_s26 + $0x38] sm:$0x77] %v1157_v14  ;;  %v1329_v19 = vld [vmem:[%s2384_s26 + $0x20] sm:$0xff] (%p2028_p10) }
 0x1cb   : > { %1171 = vst.sshfl [vmem:[#allocation1 + $0x10] sm:$0xff pattern:$0x75316420] %v2307_v2 }
 0x1cc   : > { %1172 = vst.sshfl [vmem:[#allocation1 + $0x18] sm:$0xff pattern:$0x75316420] %v2381_v30  ;;  %v1178_v26 = vld [vmem:[#allocation1 + $0x1] ss:$2 sm:$0xff] }
 0x1cd   : > { %v1679_v62 = vrot.slane %v1178_v26, 11  ;;  %v1321_v30 = vld [vmem:[%s2384_s26] sm:$0xff] (%p2028_p10)  ;;  %1326 = vst [vmem:[%s1308_s21 + $0x20] sm:$0xff] (%p2028_p10), %v1325_v16 }
 0x1ce   : > { %1322 = vst [vmem:[%s1308_s21] sm:$0xff] (%p2028_p10), %v1321_v30 }
 0x1cf   : > { %v1188_v36 = vsel %vm2365_vm4, %v1679_v62, %v1187_v33  ;;  %1328 = vst [vmem:[%s1308_s21 + $0x28] sm:$0xff] (%p2028_p10), %v1327_v17  ;;  %v1333_v23 = vld [vmem:[%s2384_s26 + $0x30] sm:$0xff] (%p2028_p10) }
 0x1d0   : > { %v1195_v24 = vadd.f32 %v1663_v7, %v1188_v36  ;;  %v1331_v20 = vld [vmem:[%s2384_s26 + $0x28] sm:$0xff] (%p2028_p10)  ;;  %1330 = vst [vmem:[%s1308_s21 + $0x40] sm:$0xff] (%p2028_p10), %v1329_v19 }
 0x1d1   : > { %v1335_v27 = vld [vmem:[%s2384_s26 + $0x38] sm:$0xff] (%p2028_p10)  ;;  %1332 = vst [vmem:[%s1308_s21 + $0x48] sm:$0xff] (%p2028_p10), %v1331_v20 }
 0x1d2   : > { %1681 = vst [vmem:[%s2384_s26 + $0x40] sm:$0x77] %v1195_v24 }
 0x1d3   : > { %v1180_v21 = vld [vmem:[#allocation1 + $0x11] ss:$2 sm:$0xff]  ;;  %1334 = vst [vmem:[%s1308_s21 + $0x60] sm:$0xff] (%p2028_p10), %v1333_v23 }
 0x1d4   : > { %v1680_v9 = vrot.slane %v1180_v21, 11  ;;  %1336 = vst [vmem:[%s1308_s21 + $0x68] sm:$0xff] (%p2028_p10), %v1335_v27 }
 0x1d5   : > { %1303 = sbr.rel (!%p2028_p10) target bundleno = 482 (0x1e2), region = 94 }
 0x1d6   : > { %v1192_v2 = vsel %vm2365_vm4, %v1680_v9, %v1191_v8 }
 0x1d7   : > { %v1196_v15 = vadd.f32 %v1664_v10, %v1192_v2 }
 0x1d9   : > { %1682 = vst [vmem:[%s2384_s26 + $0x48] sm:$0x77] %v1196_v15  ;;  %v1337_v29 = vld [vmem:[%s2384_s26 + $0x40] sm:$0xff] (%p2028_p10) }
 0x1da   : > { %1338 = vst [vmem:[%s1308_s21 + $0x80] sm:$0xff] %v1337_v29 }
 0x1e0   : > { %v1339_v32 = vld [vmem:[%s2384_s26 + $0x48] sm:$0xff] }
 0x1e1   : > { %1340 = vst [vmem:[%s1308_s21 + $0x88] sm:$0xff] %v1339_v32 }
 0x1e2 PF: > { %s18_s9 = sadd.s32 1, %s1904_s9   ;;  %s2657_s20 = sld [smem:[#allocation5_spill]] }
 0x1e3   : > { %p15_p3 = scmp.ge.s32.totalorder %s18_s9, 6   ;;  %s2658_s14 = sld [smem:[#allocation6_spill]] }
 0x1e4   : > { %s2659_s24 = smov %s1876_s25  ;;  %s2660_s25 = smov %s2015_s17 }
 0x1e5   : > { %s2661_s26 = smov %s1884_s27  ;;  %s2662_s27 = smov %s2033_s22 }
 0x1e6   : > { %s2663_s28 = smov %s1896_s30  ;;  %s2664_s29 = smov %s1900_s8 }
 0x1e7   :  { %17 = sbr.rel (!%p15_p3) target bundleno = 5 (0x5), region = 190 }
 0x1e8   : > { %s2665_s30 = smov %s2657_s20 }
 0x1e9   : > { %s2666_s8 = smov %s2658_s14 }

</bundles_post_ra>
